<compile_context>
chip_gen: v5e
topology: v5e:2x2
jax: 0.10.0
libtpu: 0.0.40
codegen_flags: <defaults>
</compile_context>

<pallas_src>
import jax
import jax.numpy as jnp
from jax.experimental import pallas as pl
from jax.experimental.pallas import tpu as pltpu

SKIP_INDEX = 0
_GN_EPS = 1e-5
_SQRT_2_OVER_PI = 0.7978845608028654
_ACT_DTYPE = jnp.bfloat16         # activation storage dtype between kernels


# ----------------------------- hardware-aware sizing -----------------------------

def _vmem_limit_bytes():
    cap = 64 * 1024 * 1024                      # v7x per-TC physical VMEM (worst case)
    try:
        info = pltpu.get_tpu_info()
        cap = int(getattr(info, "vmem_capacity_bytes", cap))
    except Exception:
        pass
    # 75% of physical capacity, capped at 100 MiB (v5e/v6e: 128 MiB, v7x: 64 MiB).
    return max(32 * 1024 * 1024, min(cap * 3 // 4, 100 * 1024 * 1024))


_VMEM_LIMIT = _vmem_limit_bytes()


def _cparams(s_arbitrary):
    return pltpu.CompilerParams(
        dimension_semantics=("parallel", "arbitrary" if s_arbitrary else "parallel"),
        vmem_limit_bytes=_VMEM_LIMIT)


def _round_up(n, m):
    return ((n + m - 1) // m) * m


def _pick_s_tile(S, Cp, Dp, vmem_budget):
    """Largest S-tile that divides S and keeps the widest fused kernel (bf16 in/out,
    double-buffered, plus f32 working copies and the 1x1-conv weights) inside VMEM."""
    row_bytes = 16 * (Cp + Dp)                  # conservative per-S-row working set
    weight_bytes = 4 * Cp * Dp                  # double-buffered bf16 conv weights
    cap = max(vmem_budget // 2 - weight_bytes, 0) // row_bytes
    cap = max(8, min(cap, 4096))
    if S <= cap:
        return S
    cap -= cap % 8
    for t in range(cap, 7, -8):
        if S % t == 0:
            return t
    return S   # TODO(synk): pad S instead of falling back to an oversize tile.


# ----------------------------- small trace-time helpers -----------------------------

def _gelu_f32(x):
    # tanh-approximate GELU (Mosaic-friendly transcendental, EUP slot).
    return 0.5 * x * (1.0 + jnp.tanh(_SQRT_2_OVER_PI * (x + 0.044715 * x * x * x)))


def _channel_mask(num_channels, w):
    return (jnp.arange(num_channels) < w).astype(jnp.float32)


def _pad_vec(v, n):
    v = jnp.asarray(v, jnp.float32).reshape(-1)
    return jnp.pad(v, (0, n - v.shape[0]))


def _pad_mat(m, r, c):
    m = jnp.asarray(m)
    return jnp.pad(m, ((0, r - m.shape[0]), (0, c - m.shape[1])))


def _gn_ac(ch_sum, ch_ssq, n_elems, gamma_eff, beta_eff):
    """Per-sample GroupNorm(1 group) fold:  gamma_eff*GN(x) + beta_eff == a*x + c.
    ch_sum/ch_ssq: (B,1,C) f32 accumulated by the producer kernel (zeros in padded /
    masked channels), n_elems = S * real_channel_count (matches PyTorch's divisor)."""
    mean = jnp.sum(ch_sum, axis=-1, keepdims=True) / n_elems          # (B,1,1)
    ex2 = jnp.sum(ch_ssq, axis=-1, keepdims=True) / n_elems
    var = jnp.maximum(ex2 - mean * mean, 0.0)
    # TODO(synk): single-pass E[x^2]-E[x]^2; a shifted/Welford form would be safer for
    # very large S or large-mean inputs.
    rstd = jax.lax.rsqrt(var + _GN_EPS)
    a = rstd * gamma_eff[None, None, :]                               # (B,1,C)
    c = beta_eff[None, None, :] - mean * a
    return jnp.concatenate([a, c], axis=1)                            # (B,2,C)


# ----------------------------- Pallas kernel builders -----------------------------

def _accumulate_stats(y, sum_ref, ssq_ref):
    # Per-channel sum / sum-of-squares accumulated across the (arbitrary) S axis.
    @pl.when(pl.program_id(1) == 0)
    def _():
        sum_ref[...] = jnp.zeros_like(sum_ref)
        ssq_ref[...] = jnp.zeros_like(ssq_ref)
    sum_ref[0] += jnp.sum(y, axis=0, keepdims=True)
    ssq_ref[0] += jnp.sum(y * y, axis=0, keepdims=True)


def _build_act_kernel(has_act, emit_stats):
    """y = s0 (.) x [+ s1 (.) gelu(x)]   (vec rows: [s0, s1])."""
    def kernel(x_ref, vec_ref, y_ref, *stat_refs):
        x = x_ref[0].astype(jnp.float32)
        vec = vec_ref[...]
        y = vec[0:1] * x
        if has_act:
            y = y + vec[1:2] * _gelu_f32(x)
        y_ref[0] = y.astype(y_ref.dtype)
        if emit_stats:
            _accumulate_stats(y, stat_refs[0], stat_refs[1])
    return kernel


def _build_mid_kernel(has_gn, has_conv, emit_stats):
    """Stage-1 + stage-2 fused:
       h = s_skip1 (.) x [+ a (.) x + c];  y = s_skip2 (.) h [+ h @ W_eff + b_eff]
       vec rows: [s_skip1, s_skip2, b_eff]."""
    def kernel(*refs):
        i = 0
        x_ref = refs[i]; i += 1
        ac_ref = None
        if has_gn:
            ac_ref = refs[i]; i += 1
        vec_ref = refs[i]; i += 1
        w_ref = None
        if has_conv:
            w_ref = refs[i]; i += 1
        y_ref = refs[i]; i += 1
        stat_refs = refs[i:]

        x = x_ref[0].astype(jnp.float32)
        vec = vec_ref[...]
        h = vec[0:1] * x
        if has_gn:
            ac = ac_ref[0]
            h = h + ac[0:1] * x + ac[1:2]
        y = vec[1:2] * h
        if has_conv:
            y = y + jnp.dot(h.astype(w_ref.dtype), w_ref[...],
                            preferred_element_type=jnp.float32) + vec[2:3]
        y_ref[0] = y.astype(y_ref.dtype)
        if emit_stats:
            _accumulate_stats(y, stat_refs[0], stat_refs[1])
    return kernel


def _build_tail_kernel(has_gn, has_act, n_skip, emit_stats):
    """Stage-3 + stage-4 (+block tail) + weighted skip-add fused (non-expand blocks).
       vec rows: [s_skip3, s_skip4, s_act4, cvec_0, ..., cvec_{n-1}]."""
    def kernel(*refs):
        i = 0
        x_ref = refs[i]; i += 1
        ac_ref = None
        if has_gn:
            ac_ref = refs[i]; i += 1
        vec_ref = refs[i]; i += 1
        skip_refs = refs[i:i + n_skip]; i += n_skip
        o_ref = refs[i]; i += 1
        stat_refs = refs[i:]

        x = x_ref[0].astype(jnp.float32)
        vec = vec_ref[...]
        h = vec[0:1] * x
        if has_gn:
            ac = ac_ref[0]
            h = h + ac[0:1] * x + ac[1:2]
        y = vec[1:2] * h
        if has_act:
            y = y + vec[2:3] * _gelu_f32(h)
        for j in range(n_skip):
            y = y + vec[3 + j:4 + j] * skip_refs[j][0].astype(jnp.float32)
        o_ref[0] = y.astype(o_ref.dtype)
        if emit_stats:
            _accumulate_stats(y, stat_refs[0], stat_refs[1])
    return kernel


def _build_tail_expand_kernel(has_gn, has_act, n_skip, emit_stats):
    """Stage-3 + stage-4 + expand_end conv1x1 (tail folded in) + weighted skip-add.
       vec_d rows (expanded width): [s_skip3, s_skip4, s_act4]
       vec_c rows (base width):     [b_end_eff, cvec_0, ..., cvec_{n-1}]."""
    def kernel(*refs):
        i = 0
        x_ref = refs[i]; i += 1
        ac_ref = None
        if has_gn:
            ac_ref = refs[i]; i += 1
        vd_ref = refs[i]; i += 1
        w_ref = refs[i]; i += 1
        vc_ref = refs[i]; i += 1
        skip_refs = refs[i:i + n_skip]; i += n_skip
        o_ref = refs[i]; i += 1
        stat_refs = refs[i:]

        x = x_ref[0].astype(jnp.float32)
        vd = vd_ref[...]
        h = vd[0:1] * x
        if has_gn:
            ac = ac_ref[0]
            h = h + ac[0:1] * x + ac[1:2]
        y = vd[1:2] * h
        if has_act:
            y = y + vd[2:3] * _gelu_f32(h)
        vc = vc_ref[...]
        z = jnp.dot(y.astype(w_ref.dtype), w_ref[...],
                    preferred_element_type=jnp.float32) + vc[0:1]
        for j in range(n_skip):
            z = z + vc[1 + j:2 + j] * skip_refs[j][0].astype(jnp.float32)
        o_ref[0] = z.astype(o_ref.dtype)
        if emit_stats:
            _accumulate_stats(z, stat_refs[0], stat_refs[1])
    return kernel


def _build_expand_start_kernel(has_act0, emit_stats):
    """expand_start (GN -> conv1x1 -> GELU, new_mask folded into W/b) + stage-0 act mix.
       vec_d rows: [b_start_eff, s_skip0, s_act0]."""
    def kernel(x_ref, ac_ref, w_ref, vd_ref, y_ref, *stat_refs):
        x = x_ref[0].astype(jnp.float32)
        ac = ac_ref[0]
        g = ac[0:1] * x + ac[1:2]                          # GroupNorm(1 group)
        vd = vd_ref[...]
        z = jnp.dot(g.astype(w_ref.dtype), w_ref[...],
                    preferred_element_type=jnp.float32) + vd[0:1]
        z = _gelu_f32(z)                                   # expand_start activation
        y = vd[1:2] * z
        if has_act0:
            y = y + vd[2:3] * _gelu_f32(z)
        y_ref[0] = y.astype(y_ref.dtype)
        if emit_stats:
            _accumulate_stats(y, stat_refs[0], stat_refs[1])
    return kernel


# ----------------------------- pallas_call wrappers -----------------------------

def _act_spec(ts, C):
    return pl.BlockSpec((1, ts, C), lambda b, s: (b, s, 0))


def _stats_out(B, C):
    shapes = [jax.ShapeDtypeStruct((B, 1, C), jnp.float32)] * 2
    specs = [pl.BlockSpec((1, 1, C), lambda b, s: (b, 0, 0))] * 2
    return shapes, specs


def _act_call(x, vec, ts, has_act, emit_stats):
    B, S, C = x.shape
    out_shapes = [jax.ShapeDtypeStruct((B, S, C), x.dtype)]
    out_specs = [_act_spec(ts, C)]
    if emit_stats:
        sh, sp = _stats_out(B, C)
        out_shapes += sh; out_specs += sp
    return pl.pallas_call(
        _build_act_kernel(has_act, emit_stats),
        out_shape=tuple(out_shapes), grid=(B, S // ts),
        in_specs=[_act_spec(ts, C), pl.BlockSpec((2, C), lambda b, s: (0, 0))],
        out_specs=tuple(out_specs),
        compiler_params=_cparams(emit_stats),
    )(x, vec)


def _mid_call(x, ac, vec, w, ts, has_gn, has_conv, emit_stats):
    B, S, C = x.shape
    in_specs, args = [_act_spec(ts, C)], [x]
    if has_gn:
        in_specs.append(pl.BlockSpec((1, 2, C), lambda b, s: (b, 0, 0))); args.append(ac)
    in_specs.append(pl.BlockSpec((3, C), lambda b, s: (0, 0))); args.append(vec)
    if has_conv:
        in_specs.append(pl.BlockSpec((C, C), lambda b, s: (0, 0))); args.append(w)
    out_shapes = [jax.ShapeDtypeStruct((B, S, C), x.dtype)]
    out_specs = [_act_spec(ts, C)]
    if emit_stats:
        sh, sp = _stats_out(B, C)
        out_shapes += sh; out_specs += sp
    return pl.pallas_call(
        _build_mid_kernel(has_gn, has_conv, emit_stats),
        out_shape=tuple(out_shapes), grid=(B, S // ts),
        in_specs=in_specs, out_specs=tuple(out_specs),
        compiler_params=_cparams(emit_stats),
    )(*args)


def _tail_call(x, ac, vec, skip_terms, ts, has_gn, has_act, emit_stats):
    B, S, C = x.shape
    n_skip = len(skip_terms)
    in_specs, args = [_act_spec(ts, C)], [x]
    if has_gn:
        in_specs.append(pl.BlockSpec((1, 2, C), lambda b, s: (b, 0, 0))); args.append(ac)
    in_specs.append(pl.BlockSpec((3 + n_skip, C), lambda b, s: (0, 0))); args.append(vec)
    for t in skip_terms:
        in_specs.append(_act_spec(ts, C)); args.append(t)
    out_shapes = [jax.ShapeDtypeStruct((B, S, C), x.dtype)]
    out_specs = [_act_spec(ts, C)]
    if emit_stats:
        sh, sp = _stats_out(B, C)
        out_shapes += sh; out_specs += sp
    return pl.pallas_call(
        _build_tail_kernel(has_gn, has_act, n_skip, emit_stats),
        out_shape=tuple(out_shapes), grid=(B, S // ts),
        in_specs=in_specs, out_specs=tuple(out_specs),
        compiler_params=_cparams(emit_stats),
    )(*args)


def _tail_expand_call(x, ac, vec_d, w_end, vec_c, skip_terms, ts, has_gn, has_act,
                      emit_stats):
    B, S, Dp = x.shape
    Cp = w_end.shape[1]
    n_skip = len(skip_terms)
    in_specs, args = [_act_spec(ts, Dp)], [x]
    if has_gn:
        in_specs.append(pl.BlockSpec((1, 2, Dp), lambda b, s: (b, 0, 0))); args.append(ac)
    in_specs.append(pl.BlockSpec((3, Dp), lambda b, s: (0, 0))); args.append(vec_d)
    in_specs.append(pl.BlockSpec((Dp, Cp), lambda b, s: (0, 0))); args.append(w_end)
    in_specs.append(pl.BlockSpec((1 + n_skip, Cp), lambda b, s: (0, 0))); args.append(vec_c)
    for t in skip_terms:
        in_specs.append(_act_spec(ts, Cp)); args.append(t)
    out_shapes = [jax.ShapeDtypeStruct((B, S, Cp), x.dtype)]
    out_specs = [_act_spec(ts, Cp)]
    if emit_stats:
        sh, sp = _stats_out(B, Cp)
        out_shapes += sh; out_specs += sp
    return pl.pallas_call(
        _build_tail_expand_kernel(has_gn, has_act, n_skip, emit_stats),
        out_shape=tuple(out_shapes), grid=(B, S // ts),
        in_specs=in_specs, out_specs=tuple(out_specs),
        compiler_params=_cparams(emit_stats),
    )(*args)


def _expand_start_call(x, ac, w_start, vec_d, ts, has_act0, emit_stats):
    B, S, Cp = x.shape
    Dp = w_start.shape[1]
    in_specs = [_act_spec(ts, Cp),
                pl.BlockSpec((1, 2, Cp), lambda b, s: (b, 0, 0)),
                pl.BlockSpec((Cp, Dp), lambda b, s: (0, 0)),
                pl.BlockSpec((3, Dp), lambda b, s: (0, 0))]
    out_shapes = [jax.ShapeDtypeStruct((B, S, Dp), x.dtype)]
    out_specs = [_act_spec(ts, Dp)]
    if emit_stats:
        sh, sp = _stats_out(B, Dp)
        out_shapes += sh; out_specs += sp
    return pl.pallas_call(
        _build_expand_start_kernel(has_act0, emit_stats),
        out_shape=tuple(out_shapes), grid=(B, S // ts),
        in_specs=in_specs, out_specs=tuple(out_specs),
        compiler_params=_cparams(emit_stats),
    )(x, ac, w_start, vec_d)


# ----------------------------- model (trace-time glue + 3 fused kernels / block) ---

def _nma_block_fused(x_in, weightss, p, dim, d_exp, Cp, Dp, mask_p, newmask_p,
                     use_expand, skip_terms, skip_cvecs, emit_out_stats, in_stats,
                     ts, S):
    """NormMixerActBlock + fused SkipBlock additions in 3 pallas_calls."""
    w = [(float(a), float(b)) for (a, b) in weightss]
    assert len(w) == 5 and all(len(ws) == 2 for ws in weightss)
    wm = newmask_p if use_expand else mask_p
    workC = Dp if use_expand else Cp
    n_norm = float(S * (d_exp if use_expand else dim))

    has_act0 = w[0][1] != 0.0
    has_gn1 = w[1][1] != 0.0
    has_conv2 = w[2][1] != 0.0
    has_gn3 = w[3][1] != 0.0
    has_act4 = w[4][1] != 0.0

    # --- kernel 1: (expand_start ->) stage-0 act mix (+ stats for the stage-1 GN) ---
    if use_expand:
        assert in_stats is not None  # emitted by the previous block's tail kernel
        ac_in = _gn_ac(in_stats[0], in_stats[1], float(S * dim),
                       _pad_vec(p['exp_gn_gamma'], Cp), _pad_vec(p['exp_gn_beta'], Cp))
        w_start = (_pad_mat(p['exp_start_w'], Cp, Dp).astype(jnp.float32)
                   * wm[None, :]).astype(p['exp_start_w'].dtype)
        vec_d = jnp.stack([_pad_vec(p['exp_start_b'], Dp) * wm,
                           w[0][0] * wm, w[0][1] * wm])
        res = _expand_start_call(x_in, ac_in, w_start, vec_d, ts, has_act0,
                                 emit_stats=has_gn1)
    else:
        vec = jnp.stack([w[0][0] * wm, w[0][1] * wm])
        res = _act_call(x_in, vec, ts, has_act0, emit_stats=has_gn1)
    y0 = res[0]
    st1 = (res[1], res[2]) if has_gn1 else None

    # --- kernel 2: stage-1 GN/scale + stage-2 conv1x1/scale (+ stats for stage-3 GN) ---
    ac1 = None
    if has_gn1:
        ac1 = _gn_ac(st1[0], st1[1], n_norm,
                     _pad_vec(p['norm1_gamma'], workC) * (w[1][1] * wm),
                     _pad_vec(p['norm1_beta'], workC) * (w[1][1] * wm))
    w2 = None
    b2 = jnp.zeros((workC,), jnp.float32)
    if has_conv2:
        col = w[2][1] * wm
        w2 = (_pad_mat(p['mixer_w'], workC, workC).astype(jnp.float32)
              * col[None, :]).astype(p['mixer_w'].dtype)
        b2 = _pad_vec(p['mixer_b'], workC) * col
    vec = jnp.stack([w[1][0] * wm, w[2][0] * wm, b2])
    res = _mid_call(y0, ac1, vec, w2, ts, has_gn1, has_conv2, emit_stats=has_gn3)
    y2 = res[0]
    st3 = (res[1], res[2]) if has_gn3 else None

    # --- kernel 3: stage-3 GN/scale + stage-4 act (+ expand_end conv) + skip add ---
    ac3 = None
    if has_gn3:
        ac3 = _gn_ac(st3[0], st3[1], n_norm,
                     _pad_vec(p['norm3_gamma'], workC) * (w[3][1] * wm),
                     _pad_vec(p['norm3_beta'], workC) * (w[3][1] * wm))
    if use_expand:
        tail = mask_p * _pad_vec(p['layer_scale'], Cp)          # *mask, layer_scale, *mask
        vec_d = jnp.stack([w[3][0] * wm, w[4][0] * wm, w[4][1] * wm])
        w_end = (_pad_mat(p['exp_end_w'], Dp, Cp).astype(jnp.float32)
                 * tail[None, :]).astype(p['exp_end_w'].dtype)
        vec_c = jnp.stack([_pad_vec(p['exp_end_b'], Cp) * tail] + list(skip_cvecs))
        return _tail_expand_call(y2, ac3, vec_d, w_end, vec_c, skip_terms, ts,
                                 has_gn3, has_act4, emit_out_stats)
    else:
        apply_ls = (w[2][0] != 1.0)   # PyTorch: use_expand or weightss[2][SKIP_INDEX] != 1
        tail = mask_p * (_pad_vec(p['layer_scale'], Cp) if apply_ls
                         else jnp.ones((Cp,), jnp.float32))
        vec = jnp.stack([w[3][0] * wm, w[4][0] * wm * tail, w[4][1] * wm * tail]
                        + list(skip_cvecs))
        return _tail_call(y2, ac3, vec, skip_terms, ts, has_gn3, has_act4,
                          emit_out_stats)


def search_block_forward(x, skip_weightss, norm_op_act_weightsss, width, ratio,
                         params, dim, expand_ratio, multiplier=3):
    """SearchBlock.forward.  x: (B, S, dim) channels-last; returns (B, S, dim)."""
    B, S, xc = x.shape
    assert xc == dim
    Cp = _round_up(dim, 128)
    d_exp = dim * expand_ratio
    Dp = _round_up(d_exp, 128)
    ts = _pick_s_tile(S, Cp, Dp, _VMEM_LIMIT)

    mask_p = _pad_vec(_channel_mask(dim, width), Cp)
    newmask_p = _pad_vec(_channel_mask(d_exp, width * ratio), Dp)

    # Zero-pad channels once at the boundary to a lane-dense multiple of 128. The
    # reference's initial `x * mask` pass is folded into every consumer's per-channel
    # scale vectors (and the skip-add coefficient vectors), so outs[0] is just padded x.
    xp = jnp.pad(x.astype(_ACT_DTYPE), ((0, 0), (0, 0), (0, Cp - dim)))

    outs = [xp]
    out_stats = None   # per-channel sum/ssq of outs[i], for the next (expand) block's GN
    pos = 0
    for i in range(multiplier):
        use_expand = (i == 1)
        next_expand = (i + 1 == 1) and (i + 1 < multiplier)
        # SkipBlock contributions (skip_module = ['skip']) fused into this block's tail.
        terms, cvecs = [], []
        for j in range(i + 1):
            c = sum(float(wv) for wv in skip_weightss[pos + j] if float(wv) != 0.0)
            if c != 0.0:
                terms.append(outs[j])
                cvecs.append(c * mask_p)
        pos += i + 1
        res = _nma_block_fused(outs[i], norm_op_act_weightsss[i],
                               params['blocks'][i], dim, d_exp, Cp, Dp,
                               mask_p, newmask_p, use_expand, terms, cvecs,
                               next_expand, out_stats, ts, S)
        out = res[0]
        out_stats = (res[1], res[2]) if next_expand else None
        outs.append(out)
        # `out * mask` (and the final `* mask`) are exact no-ops: every summed term is
        # already channel-masked by construction, so they are folded away.
    return outs[-1][:, :, :dim]


def init_params(key, dim, expand_ratio, multiplier=3, layer_scale_init_value=1e-5,
                conv_dtype=jnp.bfloat16):
    blocks = []
    keys = jax.random.split(key, multiplier)
    for i in range(multiplier):
        use_expand = (i == 1)
        d = dim * expand_ratio if use_expand else dim
        k = jax.random.split(keys[i], 10)
        p = {
            'norm1_gamma': jnp.ones((d,), jnp.float32) + 0.1 * jax.random.normal(k[0], (d,)),
            'norm1_beta': 0.1 * jax.random.normal(k[1], (d,)),
            'norm3_gamma': jnp.ones((d,), jnp.float32) + 0.1 * jax.random.normal(k[2], (d,)),
            'norm3_beta': 0.1 * jax.random.normal(k[3], (d,)),
            'mixer_w': (0.1 * jax.random.normal(k[4], (d, d))).astype(conv_dtype),
            'mixer_b': 0.1 * jax.random.normal(k[5], (d,)),
            'layer_scale': layer_scale_init_value * jnp.ones((dim,), jnp.float32),
        }
        if use_expand:
            p.update({
                'exp_gn_gamma': jnp.ones((dim,), jnp.float32),
                'exp_gn_beta': jnp.zeros((dim,), jnp.float32),
                'exp_start_w': (0.1 * jax.random.normal(k[6], (dim, d))).astype(conv_dtype),
                'exp_start_b': 0.1 * jax.random.normal(k[7], (d,)),
                'exp_end_w': (0.1 * jax.random.normal(k[8], (d, dim))).astype(conv_dtype),
                'exp_end_b': 0.1 * jax.random.normal(k[9], (dim,)),
            })
        blocks.append(p)
    return {'blocks': blocks}


# ----------------------------- Demo -----------------------------

if __name__ == "__main__":
    B, dim, H, W = 2, 8, 4, 4
    S = H * W
    expand_ratio = 4
    multiplier = 3
    width, ratio = 6, 4          # width <= dim, width*ratio <= expand_ratio*dim

    key = jax.random.PRNGKey(0)
    kx, kp = jax.random.split(key)

    # PyTorch-style NCHW input, converted to (B, S, C) channels-last for the kernels.
    x_nchw = jax.random.normal(kx, (B, dim, H, W), dtype=jnp.float32)
    x = jnp.transpose(x_nchw.reshape(B, dim, S), (0, 2, 1))

    params = init_params(kp, dim, expand_ratio, multiplier)

    # Static architecture weights (Python floats, as in the PyTorch search code).
    # skip_blocks: 1 + 2 + 3 = 6 blocks, each with 1 candidate ('skip').
    skip_weightss = [[0.5], [0.25], [0.75], [0.1], [0.4], [0.6]]
    # norm_op_act: multiplier x 5 stages x 2 candidates ([skip, op]).
    norm_op_act_weightsss = [
        [[0.4, 0.6], [0.3, 0.7], [0.5, 0.5], [0.2, 0.8], [0.9, 0.1]],   # block 0
        [[1.0, 0.0], [0.0, 1.0], [0.6, 0.4], [1.0, 0.0], [0.5, 0.5]],   # block 1 (expand)
        [[0.2, 0.8], [0.7, 0.3], [1.0, 0.0], [0.4, 0.6], [0.3, 0.7]],   # block 2 (skip mixer)
    ]

    fwd = jax.jit(lambda xx, pp: search_block_forward(
        xx, skip_weightss, norm_op_act_weightsss, width, ratio,
        pp, dim, expand_ratio, multiplier))

    out = jax.block_until_ready(fwd(x, params))

    # back to NCHW
    out_nchw = jnp.transpose(out.astype(jnp.float32), (0, 2, 1)).reshape(B, dim, H, W)
    assert out_nchw.shape == (B, dim, H, W)
    assert bool(jnp.all(jnp.isfinite(out_nchw)))
    print("KERNEL_OK")
</pallas_src>

<mosaic_0001>
module attributes {stable_mosaic.version = 11 : i64} {
  func.func @kernel(%arg0: i32, %arg1: i32, %arg2: memref<1x16x128xbf16, #tpu.memory_space<vmem>>, %arg3: memref<1x2x128xf32, #tpu.memory_space<vmem>>, %arg4: memref<3x128xf32, #tpu.memory_space<vmem>>, %arg5: memref<128x128xbf16, #tpu.memory_space<vmem>>, %arg6: memref<1x16x128xbf16, #tpu.memory_space<vmem>>, %arg7: memref<1x1x128xf32, #tpu.memory_space<vmem>>, %arg8: memref<1x1x128xf32, #tpu.memory_space<vmem>>) attributes {dimension_semantics = [#tpu.dimension_semantics<parallel>, #tpu.dimension_semantics<arbitrary>], iteration_bounds = array<i64: 2, 1>, scalar_prefetch = 0 : i64, scratch_operands = 0 : i64, tpu.core_type = #tpu.core_type<tc>, window_params = [{transform_indices = @transform_0, window_bounds = array<i64: 1, 16, 128>}, {transform_indices = @transform_1, window_bounds = array<i64: 1, 2, 128>}, {pipeline_mode = #tpu.pipeline_mode<synchronous>, transform_indices = @transform_2, window_bounds = array<i64: 3, 128>}, {pipeline_mode = #tpu.pipeline_mode<synchronous>, transform_indices = @transform_3, window_bounds = array<i64: 128, 128>}, {transform_indices = @transform_4, window_bounds = array<i64: 1, 16, 128>}, {transform_indices = @transform_5, window_bounds = array<i64: 1, 1, 128>}, {transform_indices = @transform_6, window_bounds = array<i64: 1, 1, 128>}]} {
    %c0 = arith.constant 0 : index
    %c0_0 = arith.constant 0 : index
    %c0_1 = arith.constant 0 : index
    %0 = vector.load %arg2[%c0, %c0_0, %c0_1] : memref<1x16x128xbf16, #tpu.memory_space<vmem>>, vector<1x16x128xbf16>
    %1 = vector.shape_cast %0 : vector<1x16x128xbf16> to vector<16x128xbf16>
    %2 = arith.extf %1 : vector<16x128xbf16> to vector<16x128xf32>
    %c0_2 = arith.constant 0 : index
    %c0_3 = arith.constant 0 : index
    %3 = vector.load %arg4[%c0_2, %c0_3] : memref<3x128xf32, #tpu.memory_space<vmem>>, vector<3x128xf32>
    %4 = vector.extract_strided_slice %3 {offsets = [0, 0], sizes = [1, 128], strides = [1, 1]} : vector<3x128xf32> to vector<1x128xf32>
    %5 = vector.broadcast %4 : vector<1x128xf32> to vector<16x128xf32>
    %6 = arith.mulf %5, %2 : vector<16x128xf32>
    %c0_4 = arith.constant 0 : index
    %c0_5 = arith.constant 0 : index
    %c0_6 = arith.constant 0 : index
    %7 = vector.load %arg3[%c0_4, %c0_5, %c0_6] : memref<1x2x128xf32, #tpu.memory_space<vmem>>, vector<1x2x128xf32>
    %8 = vector.shape_cast %7 : vector<1x2x128xf32> to vector<2x128xf32>
    %9 = vector.extract_strided_slice %8 {offsets = [0, 0], sizes = [1, 128], strides = [1, 1]} : vector<2x128xf32> to vector<1x128xf32>
    %10 = vector.broadcast %9 : vector<1x128xf32> to vector<16x128xf32>
    %11 = arith.mulf %10, %2 : vector<16x128xf32>
    %12 = arith.addf %6, %11 : vector<16x128xf32>
    %13 = vector.extract_strided_slice %8 {offsets = [1, 0], sizes = [1, 128], strides = [1, 1]} : vector<2x128xf32> to vector<1x128xf32>
    %14 = vector.broadcast %13 : vector<1x128xf32> to vector<16x128xf32>
    %15 = arith.addf %12, %14 : vector<16x128xf32>
    %16 = vector.extract_strided_slice %3 {offsets = [1, 0], sizes = [1, 128], strides = [1, 1]} : vector<3x128xf32> to vector<1x128xf32>
    %17 = vector.broadcast %16 : vector<1x128xf32> to vector<16x128xf32>
    %18 = arith.mulf %17, %15 : vector<16x128xf32>
    %19 = arith.truncf %15 : vector<16x128xf32> to vector<16x128xbf16>
    %c0_7 = arith.constant 0 : index
    %c0_8 = arith.constant 0 : index
    %20 = vector.load %arg5[%c0_7, %c0_8] : memref<128x128xbf16, #tpu.memory_space<vmem>>, vector<128x128xbf16>
    %cst = arith.constant dense<0.000000e+00> : vector<16x128xf32>
    %21 = tpu.matmul %19, %20, %cst {dimension_numbers = #tpu.dot_dimension_numbers<[1], [0], [0], [1], [0, 0, 1, 1], [], []>} : vector<16x128xbf16>, vector<128x128xbf16>, vector<16x128xf32> -> vector<16x128xf32>
    %22 = arith.addf %18, %21 : vector<16x128xf32>
    %23 = vector.extract_strided_slice %3 {offsets = [2, 0], sizes = [1, 128], strides = [1, 1]} : vector<3x128xf32> to vector<1x128xf32>
    %24 = vector.broadcast %23 : vector<1x128xf32> to vector<16x128xf32>
    %25 = arith.addf %22, %24 : vector<16x128xf32>
    %26 = arith.truncf %25 : vector<16x128xf32> to vector<16x128xbf16>
    %c0_9 = arith.constant 0 : index
    %c0_10 = arith.constant 0 : index
    %c0_11 = arith.constant 0 : index
    %27 = vector.load %arg6[%c0_9, %c0_10, %c0_11] : memref<1x16x128xbf16, #tpu.memory_space<vmem>>, vector<1x16x128xbf16>
    %28 = vector.shape_cast %27 : vector<1x16x128xbf16> to vector<16x128xbf16>
    %29 = vector.shape_cast %26 : vector<16x128xbf16> to vector<1x16x128xbf16>
    tpu.vector_store %arg6[%c0_9, %c0_10, %c0_11], %29 {strides = array<i32>} : memref<1x16x128xbf16, #tpu.memory_space<vmem>>, vector<1x16x128xbf16>,
    %c0_i32 = arith.constant 0 : i32
    %30 = arith.cmpi eq, %arg1, %c0_i32 : i32
    %31 = arith.extui %30 : i1 to i32
    %c0_i32_12 = arith.constant 0 : i32
    %32 = arith.cmpi ne, %31, %c0_i32_12 : i32
    scf.if %32 {
      %cst_27 = arith.constant 0.000000e+00 : f32
      %50 = vector.broadcast %cst_27 : f32 to vector<1x1x128xf32>
      %c0_28 = arith.constant 0 : index
      %c0_29 = arith.constant 0 : index
      %c0_30 = arith.constant 0 : index
      %51 = vector.load %arg7[%c0_28, %c0_29, %c0_30] : memref<1x1x128xf32, #tpu.memory_space<vmem>>, vector<1x1x128xf32>
      tpu.vector_store %arg7[%c0_28, %c0_29, %c0_30], %50 {strides = array<i32>} : memref<1x1x128xf32, #tpu.memory_space<vmem>>, vector<1x1x128xf32>,
      %cst_31 = arith.constant 0.000000e+00 : f32
      %52 = vector.broadcast %cst_31 : f32 to vector<1x1x128xf32>
      %c0_32 = arith.constant 0 : index
      %c0_33 = arith.constant 0 : index
      %c0_34 = arith.constant 0 : index
      %53 = vector.load %arg8[%c0_32, %c0_33, %c0_34] : memref<1x1x128xf32, #tpu.memory_space<vmem>>, vector<1x1x128xf32>
      tpu.vector_store %arg8[%c0_32, %c0_33, %c0_34], %52 {strides = array<i32>} : memref<1x1x128xf32, #tpu.memory_space<vmem>>, vector<1x1x128xf32>,
    } else {
    }
    %c0_13 = arith.constant 0 : index
    %c0_14 = arith.constant 0 : index
    %c0_15 = arith.constant 0 : index
    %33 = vector.load %arg7[%c0_13, %c0_14, %c0_15] : memref<1x1x128xf32, #tpu.memory_space<vmem>>, vector<1x1x128xf32>
    %34 = vector.shape_cast %33 : vector<1x1x128xf32> to vector<1x128xf32>
    %cst_16 = arith.constant dense<0.000000e+00> : vector<128xf32>
    %35 = vector.multi_reduction <add>, %25, %cst_16 [0] : vector<16x128xf32> to vector<128xf32>
    %36 = vector.shape_cast %35 : vector<128xf32> to vector<1x128xf32>
    %37 = arith.addf %34, %36 : vector<1x128xf32>
    %c0_17 = arith.constant 0 : index
    %c0_18 = arith.constant 0 : index
    %c0_19 = arith.constant 0 : index
    %38 = vector.load %arg7[%c0_17, %c0_18, %c0_19] : memref<1x1x128xf32, #tpu.memory_space<vmem>>, vector<1x1x128xf32>
    %39 = vector.shape_cast %38 : vector<1x1x128xf32> to vector<1x128xf32>
    %40 = vector.shape_cast %37 : vector<1x128xf32> to vector<1x1x128xf32>
    tpu.vector_store %arg7[%c0_17, %c0_18, %c0_19], %40 {strides = array<i32>} : memref<1x1x128xf32, #tpu.memory_space<vmem>>, vector<1x1x128xf32>,
    %c0_20 = arith.constant 0 : index
    %c0_21 = arith.constant 0 : index
    %c0_22 = arith.constant 0 : index
    %41 = vector.load %arg8[%c0_20, %c0_21, %c0_22] : memref<1x1x128xf32, #tpu.memory_space<vmem>>, vector<1x1x128xf32>
    %42 = vector.shape_cast %41 : vector<1x1x128xf32> to vector<1x128xf32>
    %43 = arith.mulf %25, %25 : vector<16x128xf32>
    %cst_23 = arith.constant dense<0.000000e+00> : vector<128xf32>
    %44 = vector.multi_reduction <add>, %43, %cst_23 [0] : vector<16x128xf32> to vector<128xf32>
    %45 = vector.shape_cast %44 : vector<128xf32> to vector<1x128xf32>
    %46 = arith.addf %42, %45 : vector<1x128xf32>
    %c0_24 = arith.constant 0 : index
    %c0_25 = arith.constant 0 : index
    %c0_26 = arith.constant 0 : index
    %47 = vector.load %arg8[%c0_24, %c0_25, %c0_26] : memref<1x1x128xf32, #tpu.memory_space<vmem>>, vector<1x1x128xf32>
    %48 = vector.shape_cast %47 : vector<1x1x128xf32> to vector<1x128xf32>
    %49 = vector.shape_cast %46 : vector<1x128xf32> to vector<1x1x128xf32>
    tpu.vector_store %arg8[%c0_24, %c0_25, %c0_26], %49 {strides = array<i32>} : memref<1x1x128xf32, #tpu.memory_space<vmem>>, vector<1x1x128xf32>,
    return
  }
  func.func @transform_0(%arg0: i32, %arg1: i32) -> (i32, i32, i32) {
    %c0_i32 = arith.constant 0 : i32
    %c0_i32_0 = arith.constant 0 : i32
    return %arg0, %arg1, %c0_i32 : i32, i32, i32
  }
  func.func @transform_1(%arg0: i32, %arg1: i32) -> (i32, i32, i32) {
    %c0_i32 = arith.constant 0 : i32
    %c0_i32_0 = arith.constant 0 : i32
    %c0_i32_1 = arith.constant 0 : i32
    return %arg0, %c0_i32, %c0_i32_0 : i32, i32, i32
  }
  func.func @transform_2(%arg0: i32, %arg1: i32) -> (i32, i32) {
    %c0_i32 = arith.constant 0 : i32
    %c0_i32_0 = arith.constant 0 : i32
    %c0_i32_1 = arith.constant 0 : i32
    return %c0_i32, %c0_i32_0 : i32, i32
  }
  func.func @transform_3(%arg0: i32, %arg1: i32) -> (i32, i32) {
    %c0_i32 = arith.constant 0 : i32
    %c0_i32_0 = arith.constant 0 : i32
    %c0_i32_1 = arith.constant 0 : i32
    return %c0_i32, %c0_i32_0 : i32, i32
  }
  func.func @transform_4(%arg0: i32, %arg1: i32) -> (i32, i32, i32) {
    %c0_i32 = arith.constant 0 : i32
    %c0_i32_0 = arith.constant 0 : i32
    return %arg0, %arg1, %c0_i32 : i32, i32, i32
  }
  func.func @transform_5(%arg0: i32, %arg1: i32) -> (i32, i32, i32) {
    %c0_i32 = arith.constant 0 : i32
    %c0_i32_0 = arith.constant 0 : i32
    %c0_i32_1 = arith.constant 0 : i32
    return %arg0, %c0_i32, %c0_i32_0 : i32, i32, i32
  }
  func.func @transform_6(%arg0: i32, %arg1: i32) -> (i32, i32, i32) {
    %c0_i32 = arith.constant 0 : i32
    %c0_i32_0 = arith.constant 0 : i32
    %c0_i32_1 = arith.constant 0 : i32
    return %arg0, %c0_i32, %c0_i32_0 : i32, i32, i32
  }
}

module attributes {stable_mosaic.version = 11 : i64} {
  func.func @kernel(%arg0: i32, %arg1: i32, %arg2: memref<1x16x128xbf16, #tpu.memory_space<vmem>>, %arg3: memref<2x128xf32, #tpu.memory_space<vmem>>, %arg4: memref<1x16x128xbf16, #tpu.memory_space<vmem>>, %arg5: memref<1x1x128xf32, #tpu.memory_space<vmem>>, %arg6: memref<1x1x128xf32, #tpu.memory_space<vmem>>) attributes {dimension_semantics = [#tpu.dimension_semantics<parallel>, #tpu.dimension_semantics<arbitrary>], iteration_bounds = array<i64: 2, 1>, scalar_prefetch = 0 : i64, scratch_operands = 0 : i64, tpu.core_type = #tpu.core_type<tc>, window_params = [{transform_indices = @transform_0, window_bounds = array<i64: 1, 16, 128>}, {pipeline_mode = #tpu.pipeline_mode<synchronous>, transform_indices = @transform_1, window_bounds = array<i64: 2, 128>}, {transform_indices = @transform_2, window_bounds = array<i64: 1, 16, 128>}, {transform_indices = @transform_3, window_bounds = array<i64: 1, 1, 128>}, {transform_indices = @transform_4, window_bounds = array<i64: 1, 1, 128>}]} {
    %c0 = arith.constant 0 : index
    %c0_0 = arith.constant 0 : index
    %c0_1 = arith.constant 0 : index
    %0 = vector.load %arg2[%c0, %c0_0, %c0_1] : memref<1x16x128xbf16, #tpu.memory_space<vmem>>, vector<1x16x128xbf16>
    %1 = vector.shape_cast %0 : vector<1x16x128xbf16> to vector<16x128xbf16>
    %2 = arith.extf %1 : vector<16x128xbf16> to vector<16x128xf32>
    %c0_2 = arith.constant 0 : index
    %c0_3 = arith.constant 0 : index
    %3 = vector.load %arg3[%c0_2, %c0_3] : memref<2x128xf32, #tpu.memory_space<vmem>>, vector<2x128xf32>
    %4 = vector.extract_strided_slice %3 {offsets = [0, 0], sizes = [1, 128], strides = [1, 1]} : vector<2x128xf32> to vector<1x128xf32>
    %5 = vector.broadcast %4 : vector<1x128xf32> to vector<16x128xf32>
    %6 = arith.mulf %5, %2 : vector<16x128xf32>
    %7 = vector.extract_strided_slice %3 {offsets = [1, 0], sizes = [1, 128], strides = [1, 1]} : vector<2x128xf32> to vector<1x128xf32>
    %cst = arith.constant 5.000000e-01 : f32
    %8 = vector.broadcast %cst : f32 to vector<16x128xf32>
    %9 = arith.mulf %8, %2 : vector<16x128xf32>
    %cst_4 = arith.constant 4.471500e-02 : f32
    %10 = vector.broadcast %cst_4 : f32 to vector<16x128xf32>
    %11 = arith.mulf %10, %2 : vector<16x128xf32>
    %12 = arith.mulf %11, %2 : vector<16x128xf32>
    %13 = arith.mulf %12, %2 : vector<16x128xf32>
    %14 = arith.addf %2, %13 : vector<16x128xf32>
    %cst_5 = arith.constant 0.797884583 : f32
    %15 = vector.broadcast %cst_5 : f32 to vector<16x128xf32>
    %16 = arith.mulf %15, %14 : vector<16x128xf32>
    %17 = math.tanh %16 : vector<16x128xf32>
    %cst_6 = arith.constant 1.000000e+00 : f32
    %18 = vector.broadcast %cst_6 : f32 to vector<16x128xf32>
    %19 = arith.addf %18, %17 : vector<16x128xf32>
    %20 = arith.mulf %9, %19 : vector<16x128xf32>
    %21 = vector.broadcast %7 : vector<1x128xf32> to vector<16x128xf32>
    %22 = arith.mulf %21, %20 : vector<16x128xf32>
    %23 = arith.addf %6, %22 : vector<16x128xf32>
    %24 = arith.truncf %23 : vector<16x128xf32> to vector<16x128xbf16>
    %c0_7 = arith.constant 0 : index
    %c0_8 = arith.constant 0 : index
    %c0_9 = arith.constant 0 : index
    %25 = vector.load %arg4[%c0_7, %c0_8, %c0_9] : memref<1x16x128xbf16, #tpu.memory_space<vmem>>, vector<1x16x128xbf16>
    %26 = vector.shape_cast %25 : vector<1x16x128xbf16> to vector<16x128xbf16>
    %27 = vector.shape_cast %24 : vector<16x128xbf16> to vector<1x16x128xbf16>
    tpu.vector_store %arg4[%c0_7, %c0_8, %c0_9], %27 {strides = array<i32>} : memref<1x16x128xbf16, #tpu.memory_space<vmem>>, vector<1x16x128xbf16>,
    %c0_i32 = arith.constant 0 : i32
    %28 = arith.cmpi eq, %arg1, %c0_i32 : i32
    %29 = arith.extui %28 : i1 to i32
    %c0_i32_10 = arith.constant 0 : i32
    %30 = arith.cmpi ne, %29, %c0_i32_10 : i32
    scf.if %30 {
      %cst_25 = arith.constant 0.000000e+00 : f32
      %48 = vector.broadcast %cst_25 : f32 to vector<1x1x128xf32>
      %c0_26 = arith.constant 0 : index
      %c0_27 = arith.constant 0 : index
      %c0_28 = arith.constant 0 : index
      %49 = vector.load %arg5[%c0_26, %c0_27, %c0_28] : memref<1x1x128xf32, #tpu.memory_space<vmem>>, vector<1x1x128xf32>
      tpu.vector_store %arg5[%c0_26, %c0_27, %c0_28], %48 {strides = array<i32>} : memref<1x1x128xf32, #tpu.memory_space<vmem>>, vector<1x1x128xf32>,
      %cst_29 = arith.constant 0.000000e+00 : f32
      %50 = vector.broadcast %cst_29 : f32 to vector<1x1x128xf32>
      %c0_30 = arith.constant 0 : index
      %c0_31 = arith.constant 0 : index
      %c0_32 = arith.constant 0 : index
      %51 = vector.load %arg6[%c0_30, %c0_31, %c0_32] : memref<1x1x128xf32, #tpu.memory_space<vmem>>, vector<1x1x128xf32>
      tpu.vector_store %arg6[%c0_30, %c0_31, %c0_32], %50 {strides = array<i32>} : memref<1x1x128xf32, #tpu.memory_space<vmem>>, vector<1x1x128xf32>,
    } else {
    }
    %c0_11 = arith.constant 0 : index
    %c0_12 = arith.constant 0 : index
    %c0_13 = arith.constant 0 : index
    %31 = vector.load %arg5[%c0_11, %c0_12, %c0_13] : memref<1x1x128xf32, #tpu.memory_space<vmem>>, vector<1x1x128xf32>
    %32 = vector.shape_cast %31 : vector<1x1x128xf32> to vector<1x128xf32>
    %cst_14 = arith.constant dense<0.000000e+00> : vector<128xf32>
    %33 = vector.multi_reduction <add>, %23, %cst_14 [0] : vector<16x128xf32> to vector<128xf32>
    %34 = vector.shape_cast %33 : vector<128xf32> to vector<1x128xf32>
    %35 = arith.addf %32, %34 : vector<1x128xf32>
    %c0_15 = arith.constant 0 : index
    %c0_16 = arith.constant 0 : index
    %c0_17 = arith.constant 0 : index
    %36 = vector.load %arg5[%c0_15, %c0_16, %c0_17] : memref<1x1x128xf32, #tpu.memory_space<vmem>>, vector<1x1x128xf32>
    %37 = vector.shape_cast %36 : vector<1x1x128xf32> to vector<1x128xf32>
    %38 = vector.shape_cast %35 : vector<1x128xf32> to vector<1x1x128xf32>
    tpu.vector_store %arg5[%c0_15, %c0_16, %c0_17], %38 {strides = array<i32>} : memref<1x1x128xf32, #tpu.memory_space<vmem>>, vector<1x1x128xf32>,
    %c0_18 = arith.constant 0 : index
    %c0_19 = arith.constant 0 : index
    %c0_20 = arith.constant 0 : index
    %39 = vector.load %arg6[%c0_18, %c0_19, %c0_20] : memref<1x1x128xf32, #tpu.memory_space<vmem>>, vector<1x1x128xf32>
    %40 = vector.shape_cast %39 : vector<1x1x128xf32> to vector<1x128xf32>
    %41 = arith.mulf %23, %23 : vector<16x128xf32>
    %cst_21 = arith.constant dense<0.000000e+00> : vector<128xf32>
    %42 = vector.multi_reduction <add>, %41, %cst_21 [0] : vector<16x128xf32> to vector<128xf32>
    %43 = vector.shape_cast %42 : vector<128xf32> to vector<1x128xf32>
    %44 = arith.addf %40, %43 : vector<1x128xf32>
    %c0_22 = arith.constant 0 : index
    %c0_23 = arith.constant 0 : index
    %c0_24 = arith.constant 0 : index
    %45 = vector.load %arg6[%c0_22, %c0_23, %c0_24] : memref<1x1x128xf32, #tpu.memory_space<vmem>>, vector<1x1x128xf32>
    %46 = vector.shape_cast %45 : vector<1x1x128xf32> to vector<1x128xf32>
    %47 = vector.shape_cast %44 : vector<1x128xf32> to vector<1x1x128xf32>
    tpu.vector_store %arg6[%c0_22, %c0_23, %c0_24], %47 {strides = array<i32>} : memref<1x1x128xf32, #tpu.memory_space<vmem>>, vector<1x1x128xf32>,
    return
  }
  func.func @transform_0(%arg0: i32, %arg1: i32) -> (i32, i32, i32) {
    %c0_i32 = arith.constant 0 : i32
    %c0_i32_0 = arith.constant 0 : i32
    return %arg0, %arg1, %c0_i32 : i32, i32, i32
  }
  func.func @transform_1(%arg0: i32, %arg1: i32) -> (i32, i32) {
    %c0_i32 = arith.constant 0 : i32
    %c0_i32_0 = arith.constant 0 : i32
    %c0_i32_1 = arith.constant 0 : i32
    return %c0_i32, %c0_i32_0 : i32, i32
  }
  func.func @transform_2(%arg0: i32, %arg1: i32) -> (i32, i32, i32) {
    %c0_i32 = arith.constant 0 : i32
    %c0_i32_0 = arith.constant 0 : i32
    return %arg0, %arg1, %c0_i32 : i32, i32, i32
  }
  func.func @transform_3(%arg0: i32, %arg1: i32) -> (i32, i32, i32) {
    %c0_i32 = arith.constant 0 : i32
    %c0_i32_0 = arith.constant 0 : i32
    %c0_i32_1 = arith.constant 0 : i32
    return %arg0, %c0_i32, %c0_i32_0 : i32, i32, i32
  }
  func.func @transform_4(%arg0: i32, %arg1: i32) -> (i32, i32, i32) {
    %c0_i32 = arith.constant 0 : i32
    %c0_i32_0 = arith.constant 0 : i32
    %c0_i32_1 = arith.constant 0 : i32
    return %arg0, %c0_i32, %c0_i32_0 : i32, i32, i32
  }
}

module attributes {stable_mosaic.version = 11 : i64} {
  func.func @kernel(%arg0: i32, %arg1: i32, %arg2: memref<1x16x128xbf16, #tpu.memory_space<vmem>>, %arg3: memref<1x2x128xf32, #tpu.memory_space<vmem>>, %arg4: memref<4x128xf32, #tpu.memory_space<vmem>>, %arg5: memref<1x16x128xbf16, #tpu.memory_space<vmem>>, %arg6: memref<1x16x128xbf16, #tpu.memory_space<vmem>>, %arg7: memref<1x1x128xf32, #tpu.memory_space<vmem>>, %arg8: memref<1x1x128xf32, #tpu.memory_space<vmem>>) attributes {dimension_semantics = [#tpu.dimension_semantics<parallel>, #tpu.dimension_semantics<arbitrary>], iteration_bounds = array<i64: 2, 1>, scalar_prefetch = 0 : i64, scratch_operands = 0 : i64, tpu.core_type = #tpu.core_type<tc>, window_params = [{transform_indices = @transform_0, window_bounds = array<i64: 1, 16, 128>}, {transform_indices = @transform_1, window_bounds = array<i64: 1, 2, 128>}, {pipeline_mode = #tpu.pipeline_mode<synchronous>, transform_indices = @transform_2, window_bounds = array<i64: 4, 128>}, {transform_indices = @transform_3, window_bounds = array<i64: 1, 16, 128>}, {transform_indices = @transform_4, window_bounds = array<i64: 1, 16, 128>}, {transform_indices = @transform_5, window_bounds = array<i64: 1, 1, 128>}, {transform_indices = @transform_6, window_bounds = array<i64: 1, 1, 128>}]} {
    %c0 = arith.constant 0 : index
    %c0_0 = arith.constant 0 : index
    %c0_1 = arith.constant 0 : index
    %0 = vector.load %arg2[%c0, %c0_0, %c0_1] : memref<1x16x128xbf16, #tpu.memory_space<vmem>>, vector<1x16x128xbf16>
    %1 = vector.shape_cast %0 : vector<1x16x128xbf16> to vector<16x128xbf16>
    %2 = arith.extf %1 : vector<16x128xbf16> to vector<16x128xf32>
    %c0_2 = arith.constant 0 : index
    %c0_3 = arith.constant 0 : index
    %3 = vector.load %arg4[%c0_2, %c0_3] : memref<4x128xf32, #tpu.memory_space<vmem>>, vector<4x128xf32>
    %4 = vector.extract_strided_slice %3 {offsets = [0, 0], sizes = [1, 128], strides = [1, 1]} : vector<4x128xf32> to vector<1x128xf32>
    %5 = vector.broadcast %4 : vector<1x128xf32> to vector<16x128xf32>
    %6 = arith.mulf %5, %2 : vector<16x128xf32>
    %c0_4 = arith.constant 0 : index
    %c0_5 = arith.constant 0 : index
    %c0_6 = arith.constant 0 : index
    %7 = vector.load %arg3[%c0_4, %c0_5, %c0_6] : memref<1x2x128xf32, #tpu.memory_space<vmem>>, vector<1x2x128xf32>
    %8 = vector.shape_cast %7 : vector<1x2x128xf32> to vector<2x128xf32>
    %9 = vector.extract_strided_slice %8 {offsets = [0, 0], sizes = [1, 128], strides = [1, 1]} : vector<2x128xf32> to vector<1x128xf32>
    %10 = vector.broadcast %9 : vector<1x128xf32> to vector<16x128xf32>
    %11 = arith.mulf %10, %2 : vector<16x128xf32>
    %12 = arith.addf %6, %11 : vector<16x128xf32>
    %13 = vector.extract_strided_slice %8 {offsets = [1, 0], sizes = [1, 128], strides = [1, 1]} : vector<2x128xf32> to vector<1x128xf32>
    %14 = vector.broadcast %13 : vector<1x128xf32> to vector<16x128xf32>
    %15 = arith.addf %12, %14 : vector<16x128xf32>
    %16 = vector.extract_strided_slice %3 {offsets = [1, 0], sizes = [1, 128], strides = [1, 1]} : vector<4x128xf32> to vector<1x128xf32>
    %17 = vector.broadcast %16 : vector<1x128xf32> to vector<16x128xf32>
    %18 = arith.mulf %17, %15 : vector<16x128xf32>
    %19 = vector.extract_strided_slice %3 {offsets = [2, 0], sizes = [1, 128], strides = [1, 1]} : vector<4x128xf32> to vector<1x128xf32>
    %cst = arith.constant 5.000000e-01 : f32
    %20 = vector.broadcast %cst : f32 to vector<16x128xf32>
    %21 = arith.mulf %20, %15 : vector<16x128xf32>
    %cst_7 = arith.constant 4.471500e-02 : f32
    %22 = vector.broadcast %cst_7 : f32 to vector<16x128xf32>
    %23 = arith.mulf %22, %15 : vector<16x128xf32>
    %24 = arith.mulf %23, %15 : vector<16x128xf32>
    %25 = arith.mulf %24, %15 : vector<16x128xf32>
    %26 = arith.addf %15, %25 : vector<16x128xf32>
    %cst_8 = arith.constant 0.797884583 : f32
    %27 = vector.broadcast %cst_8 : f32 to vector<16x128xf32>
    %28 = arith.mulf %27, %26 : vector<16x128xf32>
    %29 = math.tanh %28 : vector<16x128xf32>
    %cst_9 = arith.constant 1.000000e+00 : f32
    %30 = vector.broadcast %cst_9 : f32 to vector<16x128xf32>
    %31 = arith.addf %30, %29 : vector<16x128xf32>
    %32 = arith.mulf %21, %31 : vector<16x128xf32>
    %33 = vector.broadcast %19 : vector<1x128xf32> to vector<16x128xf32>
    %34 = arith.mulf %33, %32 : vector<16x128xf32>
    %35 = arith.addf %18, %34 : vector<16x128xf32>
    %36 = vector.extract_strided_slice %3 {offsets = [3, 0], sizes = [1, 128], strides = [1, 1]} : vector<4x128xf32> to vector<1x128xf32>
    %c0_10 = arith.constant 0 : index
    %c0_11 = arith.constant 0 : index
    %c0_12 = arith.constant 0 : index
    %37 = vector.load %arg5[%c0_10, %c0_11, %c0_12] : memref<1x16x128xbf16, #tpu.memory_space<vmem>>, vector<1x16x128xbf16>
    %38 = vector.shape_cast %37 : vector<1x16x128xbf16> to vector<16x128xbf16>
    %39 = arith.extf %38 : vector<16x128xbf16> to vector<16x128xf32>
    %40 = vector.broadcast %36 : vector<1x128xf32> to vector<16x128xf32>
    %41 = arith.mulf %40, %39 : vector<16x128xf32>
    %42 = arith.addf %35, %41 : vector<16x128xf32>
    %43 = arith.truncf %42 : vector<16x128xf32> to vector<16x128xbf16>
    %c0_13 = arith.constant 0 : index
    %c0_14 = arith.constant 0 : index
    %c0_15 = arith.constant 0 : index
    %44 = vector.load %arg6[%c0_13, %c0_14, %c0_15] : memref<1x16x128xbf16, #tpu.memory_space<vmem>>, vector<1x16x128xbf16>
    %45 = vector.shape_cast %44 : vector<1x16x128xbf16> to vector<16x128xbf16>
    %46 = vector.shape_cast %43 : vector<16x128xbf16> to vector<1x16x128xbf16>
    tpu.vector_store %arg6[%c0_13, %c0_14, %c0_15], %46 {strides = array<i32>} : memref<1x16x128xbf16, #tpu.memory_space<vmem>>, vector<1x16x128xbf16>,
    %c0_i32 = arith.constant 0 : i32
    %47 = arith.cmpi eq, %arg1, %c0_i32 : i32
    %48 = arith.extui %47 : i1 to i32
    %c0_i32_16 = arith.constant 0 : i32
    %49 = arith.cmpi ne, %48, %c0_i32_16 : i32
    scf.if %49 {
      %cst_31 = arith.constant 0.000000e+00 : f32
      %67 = vector.broadcast %cst_31 : f32 to vector<1x1x128xf32>
      %c0_32 = arith.constant 0 : index
      %c0_33 = arith.constant 0 : index
      %c0_34 = arith.constant 0 : index
      %68 = vector.load %arg7[%c0_32, %c0_33, %c0_34] : memref<1x1x128xf32, #tpu.memory_space<vmem>>, vector<1x1x128xf32>
      tpu.vector_store %arg7[%c0_32, %c0_33, %c0_34], %67 {strides = array<i32>} : memref<1x1x128xf32, #tpu.memory_space<vmem>>, vector<1x1x128xf32>,
      %cst_35 = arith.constant 0.000000e+00 : f32
      %69 = vector.broadcast %cst_35 : f32 to vector<1x1x128xf32>
      %c0_36 = arith.constant 0 : index
      %c0_37 = arith.constant 0 : index
      %c0_38 = arith.constant 0 : index
      %70 = vector.load %arg8[%c0_36, %c0_37, %c0_38] : memref<1x1x128xf32, #tpu.memory_space<vmem>>, vector<1x1x128xf32>
      tpu.vector_store %arg8[%c0_36, %c0_37, %c0_38], %69 {strides = array<i32>} : memref<1x1x128xf32, #tpu.memory_space<vmem>>, vector<1x1x128xf32>,
    } else {
    }
    %c0_17 = arith.constant 0 : index
    %c0_18 = arith.constant 0 : index
    %c0_19 = arith.constant 0 : index
    %50 = vector.load %arg7[%c0_17, %c0_18, %c0_19] : memref<1x1x128xf32, #tpu.memory_space<vmem>>, vector<1x1x128xf32>
    %51 = vector.shape_cast %50 : vector<1x1x128xf32> to vector<1x128xf32>
    %cst_20 = arith.constant dense<0.000000e+00> : vector<128xf32>
    %52 = vector.multi_reduction <add>, %42, %cst_20 [0] : vector<16x128xf32> to vector<128xf32>
    %53 = vector.shape_cast %52 : vector<128xf32> to vector<1x128xf32>
    %54 = arith.addf %51, %53 : vector<1x128xf32>
    %c0_21 = arith.constant 0 : index
    %c0_22 = arith.constant 0 : index
    %c0_23 = arith.constant 0 : index
    %55 = vector.load %arg7[%c0_21, %c0_22, %c0_23] : memref<1x1x128xf32, #tpu.memory_space<vmem>>, vector<1x1x128xf32>
    %56 = vector.shape_cast %55 : vector<1x1x128xf32> to vector<1x128xf32>
    %57 = vector.shape_cast %54 : vector<1x128xf32> to vector<1x1x128xf32>
    tpu.vector_store %arg7[%c0_21, %c0_22, %c0_23], %57 {strides = array<i32>} : memref<1x1x128xf32, #tpu.memory_space<vmem>>, vector<1x1x128xf32>,
    %c0_24 = arith.constant 0 : index
    %c0_25 = arith.constant 0 : index
    %c0_26 = arith.constant 0 : index
    %58 = vector.load %arg8[%c0_24, %c0_25, %c0_26] : memref<1x1x128xf32, #tpu.memory_space<vmem>>, vector<1x1x128xf32>
    %59 = vector.shape_cast %58 : vector<1x1x128xf32> to vector<1x128xf32>
    %60 = arith.mulf %42, %42 : vector<16x128xf32>
    %cst_27 = arith.constant dense<0.000000e+00> : vector<128xf32>
    %61 = vector.multi_reduction <add>, %60, %cst_27 [0] : vector<16x128xf32> to vector<128xf32>
    %62 = vector.shape_cast %61 : vector<128xf32> to vector<1x128xf32>
    %63 = arith.addf %59, %62 : vector<1x128xf32>
    %c0_28 = arith.constant 0 : index
    %c0_29 = arith.constant 0 : index
    %c0_30 = arith.constant 0 : index
    %64 = vector.load %arg8[%c0_28, %c0_29, %c0_30] : memref<1x1x128xf32, #tpu.memory_space<vmem>>, vector<1x1x128xf32>
    %65 = vector.shape_cast %64 : vector<1x1x128xf32> to vector<1x128xf32>
    %66 = vector.shape_cast %63 : vector<1x128xf32> to vector<1x1x128xf32>
    tpu.vector_store %arg8[%c0_28, %c0_29, %c0_30], %66 {strides = array<i32>} : memref<1x1x128xf32, #tpu.memory_space<vmem>>, vector<1x1x128xf32>,
    return
  }
  func.func @transform_0(%arg0: i32, %arg1: i32) -> (i32, i32, i32) {
    %c0_i32 = arith.constant 0 : i32
    %c0_i32_0 = arith.constant 0 : i32
    return %arg0, %arg1, %c0_i32 : i32, i32, i32
  }
  func.func @transform_1(%arg0: i32, %arg1: i32) -> (i32, i32, i32) {
    %c0_i32 = arith.constant 0 : i32
    %c0_i32_0 = arith.constant 0 : i32
    %c0_i32_1 = arith.constant 0 : i32
    return %arg0, %c0_i32, %c0_i32_0 : i32, i32, i32
  }
  func.func @transform_2(%arg0: i32, %arg1: i32) -> (i32, i32) {
    %c0_i32 = arith.constant 0 : i32
    %c0_i32_0 = arith.constant 0 : i32
    %c0_i32_1 = arith.constant 0 : i32
    return %c0_i32, %c0_i32_0 : i32, i32
  }
  func.func @transform_3(%arg0: i32, %arg1: i32) -> (i32, i32, i32) {
    %c0_i32 = arith.constant 0 : i32
    %c0_i32_0 = arith.constant 0 : i32
    return %arg0, %arg1, %c0_i32 : i32, i32, i32
  }
  func.func @transform_4(%arg0: i32, %arg1: i32) -> (i32, i32, i32) {
    %c0_i32 = arith.constant 0 : i32
    %c0_i32_0 = arith.constant 0 : i32
    return %arg0, %arg1, %c0_i32 : i32, i32, i32
  }
  func.func @transform_5(%arg0: i32, %arg1: i32) -> (i32, i32, i32) {
    %c0_i32 = arith.constant 0 : i32
    %c0_i32_0 = arith.constant 0 : i32
    %c0_i32_1 = arith.constant 0 : i32
    return %arg0, %c0_i32, %c0_i32_0 : i32, i32, i32
  }
  func.func @transform_6(%arg0: i32, %arg1: i32) -> (i32, i32, i32) {
    %c0_i32 = arith.constant 0 : i32
    %c0_i32_0 = arith.constant 0 : i32
    %c0_i32_1 = arith.constant 0 : i32
    return %arg0, %c0_i32, %c0_i32_0 : i32, i32, i32
  }
}

module attributes {stable_mosaic.version = 11 : i64} {
  func.func @kernel(%arg0: i32, %arg1: i32, %arg2: memref<1x16x128xbf16, #tpu.memory_space<vmem>>, %arg3: memref<1x2x128xf32, #tpu.memory_space<vmem>>, %arg4: memref<128x128xbf16, #tpu.memory_space<vmem>>, %arg5: memref<3x128xf32, #tpu.memory_space<vmem>>, %arg6: memref<1x16x128xbf16, #tpu.memory_space<vmem>>, %arg7: memref<1x1x128xf32, #tpu.memory_space<vmem>>, %arg8: memref<1x1x128xf32, #tpu.memory_space<vmem>>) attributes {dimension_semantics = [#tpu.dimension_semantics<parallel>, #tpu.dimension_semantics<arbitrary>], iteration_bounds = array<i64: 2, 1>, scalar_prefetch = 0 : i64, scratch_operands = 0 : i64, tpu.core_type = #tpu.core_type<tc>, window_params = [{transform_indices = @transform_0, window_bounds = array<i64: 1, 16, 128>}, {transform_indices = @transform_1, window_bounds = array<i64: 1, 2, 128>}, {pipeline_mode = #tpu.pipeline_mode<synchronous>, transform_indices = @transform_2, window_bounds = array<i64: 128, 128>}, {pipeline_mode = #tpu.pipeline_mode<synchronous>, transform_indices = @transform_3, window_bounds = array<i64: 3, 128>}, {transform_indices = @transform_4, window_bounds = array<i64: 1, 16, 128>}, {transform_indices = @transform_5, window_bounds = array<i64: 1, 1, 128>}, {transform_indices = @transform_6, window_bounds = array<i64: 1, 1, 128>}]} {
    %c0 = arith.constant 0 : index
    %c0_0 = arith.constant 0 : index
    %c0_1 = arith.constant 0 : index
    %0 = vector.load %arg2[%c0, %c0_0, %c0_1] : memref<1x16x128xbf16, #tpu.memory_space<vmem>>, vector<1x16x128xbf16>
    %1 = vector.shape_cast %0 : vector<1x16x128xbf16> to vector<16x128xbf16>
    %2 = arith.extf %1 : vector<16x128xbf16> to vector<16x128xf32>
    %c0_2 = arith.constant 0 : index
    %c0_3 = arith.constant 0 : index
    %c0_4 = arith.constant 0 : index
    %3 = vector.load %arg3[%c0_2, %c0_3, %c0_4] : memref<1x2x128xf32, #tpu.memory_space<vmem>>, vector<1x2x128xf32>
    %4 = vector.shape_cast %3 : vector<1x2x128xf32> to vector<2x128xf32>
    %5 = vector.extract_strided_slice %4 {offsets = [0, 0], sizes = [1, 128], strides = [1, 1]} : vector<2x128xf32> to vector<1x128xf32>
    %6 = vector.broadcast %5 : vector<1x128xf32> to vector<16x128xf32>
    %7 = arith.mulf %6, %2 : vector<16x128xf32>
    %8 = vector.extract_strided_slice %4 {offsets = [1, 0], sizes = [1, 128], strides = [1, 1]} : vector<2x128xf32> to vector<1x128xf32>
    %9 = vector.broadcast %8 : vector<1x128xf32> to vector<16x128xf32>
    %10 = arith.addf %7, %9 : vector<16x128xf32>
    %c0_5 = arith.constant 0 : index
    %c0_6 = arith.constant 0 : index
    %11 = vector.load %arg5[%c0_5, %c0_6] : memref<3x128xf32, #tpu.memory_space<vmem>>, vector<3x128xf32>
    %12 = arith.truncf %10 : vector<16x128xf32> to vector<16x128xbf16>
    %c0_7 = arith.constant 0 : index
    %c0_8 = arith.constant 0 : index
    %13 = vector.load %arg4[%c0_7, %c0_8] : memref<128x128xbf16, #tpu.memory_space<vmem>>, vector<128x128xbf16>
    %cst = arith.constant dense<0.000000e+00> : vector<16x128xf32>
    %14 = tpu.matmul %12, %13, %cst {dimension_numbers = #tpu.dot_dimension_numbers<[1], [0], [0], [1], [0, 0, 1, 1], [], []>} : vector<16x128xbf16>, vector<128x128xbf16>, vector<16x128xf32> -> vector<16x128xf32>
    %15 = vector.extract_strided_slice %11 {offsets = [0, 0], sizes = [1, 128], strides = [1, 1]} : vector<3x128xf32> to vector<1x128xf32>
    %16 = vector.broadcast %15 : vector<1x128xf32> to vector<16x128xf32>
    %17 = arith.addf %14, %16 : vector<16x128xf32>
    %cst_9 = arith.constant 5.000000e-01 : f32
    %18 = vector.broadcast %cst_9 : f32 to vector<16x128xf32>
    %19 = arith.mulf %18, %17 : vector<16x128xf32>
    %cst_10 = arith.constant 4.471500e-02 : f32
    %20 = vector.broadcast %cst_10 : f32 to vector<16x128xf32>
    %21 = arith.mulf %20, %17 : vector<16x128xf32>
    %22 = arith.mulf %21, %17 : vector<16x128xf32>
    %23 = arith.mulf %22, %17 : vector<16x128xf32>
    %24 = arith.addf %17, %23 : vector<16x128xf32>
    %cst_11 = arith.constant 0.797884583 : f32
    %25 = vector.broadcast %cst_11 : f32 to vector<16x128xf32>
    %26 = arith.mulf %25, %24 : vector<16x128xf32>
    %27 = math.tanh %26 : vector<16x128xf32>
    %cst_12 = arith.constant 1.000000e+00 : f32
    %28 = vector.broadcast %cst_12 : f32 to vector<16x128xf32>
    %29 = arith.addf %28, %27 : vector<16x128xf32>
    %30 = arith.mulf %19, %29 : vector<16x128xf32>
    %31 = vector.extract_strided_slice %11 {offsets = [1, 0], sizes = [1, 128], strides = [1, 1]} : vector<3x128xf32> to vector<1x128xf32>
    %32 = vector.broadcast %31 : vector<1x128xf32> to vector<16x128xf32>
    %33 = arith.mulf %32, %30 : vector<16x128xf32>
    %34 = arith.truncf %33 : vector<16x128xf32> to vector<16x128xbf16>
    %c0_13 = arith.constant 0 : index
    %c0_14 = arith.constant 0 : index
    %c0_15 = arith.constant 0 : index
    %35 = vector.load %arg6[%c0_13, %c0_14, %c0_15] : memref<1x16x128xbf16, #tpu.memory_space<vmem>>, vector<1x16x128xbf16>
    %36 = vector.shape_cast %35 : vector<1x16x128xbf16> to vector<16x128xbf16>
    %37 = vector.shape_cast %34 : vector<16x128xbf16> to vector<1x16x128xbf16>
    tpu.vector_store %arg6[%c0_13, %c0_14, %c0_15], %37 {strides = array<i32>} : memref<1x16x128xbf16, #tpu.memory_space<vmem>>, vector<1x16x128xbf16>,
    %c0_i32 = arith.constant 0 : i32
    %38 = arith.cmpi eq, %arg1, %c0_i32 : i32
    %39 = arith.extui %38 : i1 to i32
    %c0_i32_16 = arith.constant 0 : i32
    %40 = arith.cmpi ne, %39, %c0_i32_16 : i32
    scf.if %40 {
      %cst_31 = arith.constant 0.000000e+00 : f32
      %58 = vector.broadcast %cst_31 : f32 to vector<1x1x128xf32>
      %c0_32 = arith.constant 0 : index
      %c0_33 = arith.constant 0 : index
      %c0_34 = arith.constant 0 : index
      %59 = vector.load %arg7[%c0_32, %c0_33, %c0_34] : memref<1x1x128xf32, #tpu.memory_space<vmem>>, vector<1x1x128xf32>
      tpu.vector_store %arg7[%c0_32, %c0_33, %c0_34], %58 {strides = array<i32>} : memref<1x1x128xf32, #tpu.memory_space<vmem>>, vector<1x1x128xf32>,
      %cst_35 = arith.constant 0.000000e+00 : f32
      %60 = vector.broadcast %cst_35 : f32 to vector<1x1x128xf32>
      %c0_36 = arith.constant 0 : index
      %c0_37 = arith.constant 0 : index
      %c0_38 = arith.constant 0 : index
      %61 = vector.load %arg8[%c0_36, %c0_37, %c0_38] : memref<1x1x128xf32, #tpu.memory_space<vmem>>, vector<1x1x128xf32>
      tpu.vector_store %arg8[%c0_36, %c0_37, %c0_38], %60 {strides = array<i32>} : memref<1x1x128xf32, #tpu.memory_space<vmem>>, vector<1x1x128xf32>,
    } else {
    }
    %c0_17 = arith.constant 0 : index
    %c0_18 = arith.constant 0 : index
    %c0_19 = arith.constant 0 : index
    %41 = vector.load %arg7[%c0_17, %c0_18, %c0_19] : memref<1x1x128xf32, #tpu.memory_space<vmem>>, vector<1x1x128xf32>
    %42 = vector.shape_cast %41 : vector<1x1x128xf32> to vector<1x128xf32>
    %cst_20 = arith.constant dense<0.000000e+00> : vector<128xf32>
    %43 = vector.multi_reduction <add>, %33, %cst_20 [0] : vector<16x128xf32> to vector<128xf32>
    %44 = vector.shape_cast %43 : vector<128xf32> to vector<1x128xf32>
    %45 = arith.addf %42, %44 : vector<1x128xf32>
    %c0_21 = arith.constant 0 : index
    %c0_22 = arith.constant 0 : index
    %c0_23 = arith.constant 0 : index
    %46 = vector.load %arg7[%c0_21, %c0_22, %c0_23] : memref<1x1x128xf32, #tpu.memory_space<vmem>>, vector<1x1x128xf32>
    %47 = vector.shape_cast %46 : vector<1x1x128xf32> to vector<1x128xf32>
    %48 = vector.shape_cast %45 : vector<1x128xf32> to vector<1x1x128xf32>
    tpu.vector_store %arg7[%c0_21, %c0_22, %c0_23], %48 {strides = array<i32>} : memref<1x1x128xf32, #tpu.memory_space<vmem>>, vector<1x1x128xf32>,
    %c0_24 = arith.constant 0 : index
    %c0_25 = arith.constant 0 : index
    %c0_26 = arith.constant 0 : index
    %49 = vector.load %arg8[%c0_24, %c0_25, %c0_26] : memref<1x1x128xf32, #tpu.memory_space<vmem>>, vector<1x1x128xf32>
    %50 = vector.shape_cast %49 : vector<1x1x128xf32> to vector<1x128xf32>
    %51 = arith.mulf %33, %33 : vector<16x128xf32>
    %cst_27 = arith.constant dense<0.000000e+00> : vector<128xf32>
    %52 = vector.multi_reduction <add>, %51, %cst_27 [0] : vector<16x128xf32> to vector<128xf32>
    %53 = vector.shape_cast %52 : vector<128xf32> to vector<1x128xf32>
    %54 = arith.addf %50, %53 : vector<1x128xf32>
    %c0_28 = arith.constant 0 : index
    %c0_29 = arith.constant 0 : index
    %c0_30 = arith.constant 0 : index
    %55 = vector.load %arg8[%c0_28, %c0_29, %c0_30] : memref<1x1x128xf32, #tpu.memory_space<vmem>>, vector<1x1x128xf32>
    %56 = vector.shape_cast %55 : vector<1x1x128xf32> to vector<1x128xf32>
    %57 = vector.shape_cast %54 : vector<1x128xf32> to vector<1x1x128xf32>
    tpu.vector_store %arg8[%c0_28, %c0_29, %c0_30], %57 {strides = array<i32>} : memref<1x1x128xf32, #tpu.memory_space<vmem>>, vector<1x1x128xf32>,
    return
  }
  func.func @transform_0(%arg0: i32, %arg1: i32) -> (i32, i32, i32) {
    %c0_i32 = arith.constant 0 : i32
    %c0_i32_0 = arith.constant 0 : i32
    return %arg0, %arg1, %c0_i32 : i32, i32, i32
  }
  func.func @transform_1(%arg0: i32, %arg1: i32) -> (i32, i32, i32) {
    %c0_i32 = arith.constant 0 : i32
    %c0_i32_0 = arith.constant 0 : i32
    %c0_i32_1 = arith.constant 0 : i32
    return %arg0, %c0_i32, %c0_i32_0 : i32, i32, i32
  }
  func.func @transform_2(%arg0: i32, %arg1: i32) -> (i32, i32) {
    %c0_i32 = arith.constant 0 : i32
    %c0_i32_0 = arith.constant 0 : i32
    %c0_i32_1 = arith.constant 0 : i32
    return %c0_i32, %c0_i32_0 : i32, i32
  }
  func.func @transform_3(%arg0: i32, %arg1: i32) -> (i32, i32) {
    %c0_i32 = arith.constant 0 : i32
    %c0_i32_0 = arith.constant 0 : i32
    %c0_i32_1 = arith.constant 0 : i32
    return %c0_i32, %c0_i32_0 : i32, i32
  }
  func.func @transform_4(%arg0: i32, %arg1: i32) -> (i32, i32, i32) {
    %c0_i32 = arith.constant 0 : i32
    %c0_i32_0 = arith.constant 0 : i32
    return %arg0, %arg1, %c0_i32 : i32, i32, i32
  }
  func.func @transform_5(%arg0: i32, %arg1: i32) -> (i32, i32, i32) {
    %c0_i32 = arith.constant 0 : i32
    %c0_i32_0 = arith.constant 0 : i32
    %c0_i32_1 = arith.constant 0 : i32
    return %arg0, %c0_i32, %c0_i32_0 : i32, i32, i32
  }
  func.func @transform_6(%arg0: i32, %arg1: i32) -> (i32, i32, i32) {
    %c0_i32 = arith.constant 0 : i32
    %c0_i32_0 = arith.constant 0 : i32
    %c0_i32_1 = arith.constant 0 : i32
    return %arg0, %c0_i32, %c0_i32_0 : i32, i32, i32
  }
}

module attributes {stable_mosaic.version = 11 : i64} {
  func.func @kernel(%arg0: i32, %arg1: i32, %arg2: memref<1x16x128xbf16, #tpu.memory_space<vmem>>, %arg3: memref<1x2x128xf32, #tpu.memory_space<vmem>>, %arg4: memref<3x128xf32, #tpu.memory_space<vmem>>, %arg5: memref<128x128xbf16, #tpu.memory_space<vmem>>, %arg6: memref<1x16x128xbf16, #tpu.memory_space<vmem>>) attributes {dimension_semantics = [#tpu.dimension_semantics<parallel>, #tpu.dimension_semantics<parallel>], iteration_bounds = array<i64: 2, 1>, scalar_prefetch = 0 : i64, scratch_operands = 0 : i64, tpu.core_type = #tpu.core_type<tc>, window_params = [{transform_indices = @transform_0, window_bounds = array<i64: 1, 16, 128>}, {transform_indices = @transform_1, window_bounds = array<i64: 1, 2, 128>}, {pipeline_mode = #tpu.pipeline_mode<synchronous>, transform_indices = @transform_2, window_bounds = array<i64: 3, 128>}, {pipeline_mode = #tpu.pipeline_mode<synchronous>, transform_indices = @transform_3, window_bounds = array<i64: 128, 128>}, {transform_indices = @transform_4, window_bounds = array<i64: 1, 16, 128>}]} {
    %c0 = arith.constant 0 : index
    %c0_0 = arith.constant 0 : index
    %c0_1 = arith.constant 0 : index
    %0 = vector.load %arg2[%c0, %c0_0, %c0_1] : memref<1x16x128xbf16, #tpu.memory_space<vmem>>, vector<1x16x128xbf16>
    %1 = vector.shape_cast %0 : vector<1x16x128xbf16> to vector<16x128xbf16>
    %2 = arith.extf %1 : vector<16x128xbf16> to vector<16x128xf32>
    %c0_2 = arith.constant 0 : index
    %c0_3 = arith.constant 0 : index
    %3 = vector.load %arg4[%c0_2, %c0_3] : memref<3x128xf32, #tpu.memory_space<vmem>>, vector<3x128xf32>
    %4 = vector.extract_strided_slice %3 {offsets = [0, 0], sizes = [1, 128], strides = [1, 1]} : vector<3x128xf32> to vector<1x128xf32>
    %5 = vector.broadcast %4 : vector<1x128xf32> to vector<16x128xf32>
    %6 = arith.mulf %5, %2 : vector<16x128xf32>
    %c0_4 = arith.constant 0 : index
    %c0_5 = arith.constant 0 : index
    %c0_6 = arith.constant 0 : index
    %7 = vector.load %arg3[%c0_4, %c0_5, %c0_6] : memref<1x2x128xf32, #tpu.memory_space<vmem>>, vector<1x2x128xf32>
    %8 = vector.shape_cast %7 : vector<1x2x128xf32> to vector<2x128xf32>
    %9 = vector.extract_strided_slice %8 {offsets = [0, 0], sizes = [1, 128], strides = [1, 1]} : vector<2x128xf32> to vector<1x128xf32>
    %10 = vector.broadcast %9 : vector<1x128xf32> to vector<16x128xf32>
    %11 = arith.mulf %10, %2 : vector<16x128xf32>
    %12 = arith.addf %6, %11 : vector<16x128xf32>
    %13 = vector.extract_strided_slice %8 {offsets = [1, 0], sizes = [1, 128], strides = [1, 1]} : vector<2x128xf32> to vector<1x128xf32>
    %14 = vector.broadcast %13 : vector<1x128xf32> to vector<16x128xf32>
    %15 = arith.addf %12, %14 : vector<16x128xf32>
    %16 = vector.extract_strided_slice %3 {offsets = [1, 0], sizes = [1, 128], strides = [1, 1]} : vector<3x128xf32> to vector<1x128xf32>
    %17 = vector.broadcast %16 : vector<1x128xf32> to vector<16x128xf32>
    %18 = arith.mulf %17, %15 : vector<16x128xf32>
    %19 = arith.truncf %15 : vector<16x128xf32> to vector<16x128xbf16>
    %c0_7 = arith.constant 0 : index
    %c0_8 = arith.constant 0 : index
    %20 = vector.load %arg5[%c0_7, %c0_8] : memref<128x128xbf16, #tpu.memory_space<vmem>>, vector<128x128xbf16>
    %cst = arith.constant dense<0.000000e+00> : vector<16x128xf32>
    %21 = tpu.matmul %19, %20, %cst {dimension_numbers = #tpu.dot_dimension_numbers<[1], [0], [0], [1], [0, 0, 1, 1], [], []>} : vector<16x128xbf16>, vector<128x128xbf16>, vector<16x128xf32> -> vector<16x128xf32>
    %22 = arith.addf %18, %21 : vector<16x128xf32>
    %23 = vector.extract_strided_slice %3 {offsets = [2, 0], sizes = [1, 128], strides = [1, 1]} : vector<3x128xf32> to vector<1x128xf32>
    %24 = vector.broadcast %23 : vector<1x128xf32> to vector<16x128xf32>
    %25 = arith.addf %22, %24 : vector<16x128xf32>
    %26 = arith.truncf %25 : vector<16x128xf32> to vector<16x128xbf16>
    %c0_9 = arith.constant 0 : index
    %c0_10 = arith.constant 0 : index
    %c0_11 = arith.constant 0 : index
    %27 = vector.load %arg6[%c0_9, %c0_10, %c0_11] : memref<1x16x128xbf16, #tpu.memory_space<vmem>>, vector<1x16x128xbf16>
    %28 = vector.shape_cast %27 : vector<1x16x128xbf16> to vector<16x128xbf16>
    %29 = vector.shape_cast %26 : vector<16x128xbf16> to vector<1x16x128xbf16>
    tpu.vector_store %arg6[%c0_9, %c0_10, %c0_11], %29 {strides = array<i32>} : memref<1x16x128xbf16, #tpu.memory_space<vmem>>, vector<1x16x128xbf16>,
    return
  }
  func.func @transform_0(%arg0: i32, %arg1: i32) -> (i32, i32, i32) {
    %c0_i32 = arith.constant 0 : i32
    %c0_i32_0 = arith.constant 0 : i32
    return %arg0, %arg1, %c0_i32 : i32, i32, i32
  }
  func.func @transform_1(%arg0: i32, %arg1: i32) -> (i32, i32, i32) {
    %c0_i32 = arith.constant 0 : i32
    %c0_i32_0 = arith.constant 0 : i32
    %c0_i32_1 = arith.constant 0 : i32
    return %arg0, %c0_i32, %c0_i32_0 : i32, i32, i32
  }
  func.func @transform_2(%arg0: i32, %arg1: i32) -> (i32, i32) {
    %c0_i32 = arith.constant 0 : i32
    %c0_i32_0 = arith.constant 0 : i32
    %c0_i32_1 = arith.constant 0 : i32
    return %c0_i32, %c0_i32_0 : i32, i32
  }
  func.func @transform_3(%arg0: i32, %arg1: i32) -> (i32, i32) {
    %c0_i32 = arith.constant 0 : i32
    %c0_i32_0 = arith.constant 0 : i32
    %c0_i32_1 = arith.constant 0 : i32
    return %c0_i32, %c0_i32_0 : i32, i32
  }
  func.func @transform_4(%arg0: i32, %arg1: i32) -> (i32, i32, i32) {
    %c0_i32 = arith.constant 0 : i32
    %c0_i32_0 = arith.constant 0 : i32
    return %arg0, %arg1, %c0_i32 : i32, i32, i32
  }
}

module attributes {stable_mosaic.version = 11 : i64} {
  func.func @kernel(%arg0: i32, %arg1: i32, %arg2: memref<1x16x128xbf16, #tpu.memory_space<vmem>>, %arg3: memref<1x2x128xf32, #tpu.memory_space<vmem>>, %arg4: memref<3x128xf32, #tpu.memory_space<vmem>>, %arg5: memref<1x16x128xbf16, #tpu.memory_space<vmem>>, %arg6: memref<1x1x128xf32, #tpu.memory_space<vmem>>, %arg7: memref<1x1x128xf32, #tpu.memory_space<vmem>>) attributes {dimension_semantics = [#tpu.dimension_semantics<parallel>, #tpu.dimension_semantics<arbitrary>], iteration_bounds = array<i64: 2, 1>, scalar_prefetch = 0 : i64, scratch_operands = 0 : i64, tpu.core_type = #tpu.core_type<tc>, window_params = [{transform_indices = @transform_0, window_bounds = array<i64: 1, 16, 128>}, {transform_indices = @transform_1, window_bounds = array<i64: 1, 2, 128>}, {pipeline_mode = #tpu.pipeline_mode<synchronous>, transform_indices = @transform_2, window_bounds = array<i64: 3, 128>}, {transform_indices = @transform_3, window_bounds = array<i64: 1, 16, 128>}, {transform_indices = @transform_4, window_bounds = array<i64: 1, 1, 128>}, {transform_indices = @transform_5, window_bounds = array<i64: 1, 1, 128>}]} {
    %c0 = arith.constant 0 : index
    %c0_0 = arith.constant 0 : index
    %c0_1 = arith.constant 0 : index
    %0 = vector.load %arg2[%c0, %c0_0, %c0_1] : memref<1x16x128xbf16, #tpu.memory_space<vmem>>, vector<1x16x128xbf16>
    %1 = vector.shape_cast %0 : vector<1x16x128xbf16> to vector<16x128xbf16>
    %2 = arith.extf %1 : vector<16x128xbf16> to vector<16x128xf32>
    %c0_2 = arith.constant 0 : index
    %c0_3 = arith.constant 0 : index
    %3 = vector.load %arg4[%c0_2, %c0_3] : memref<3x128xf32, #tpu.memory_space<vmem>>, vector<3x128xf32>
    %4 = vector.extract_strided_slice %3 {offsets = [0, 0], sizes = [1, 128], strides = [1, 1]} : vector<3x128xf32> to vector<1x128xf32>
    %5 = vector.broadcast %4 : vector<1x128xf32> to vector<16x128xf32>
    %6 = arith.mulf %5, %2 : vector<16x128xf32>
    %c0_4 = arith.constant 0 : index
    %c0_5 = arith.constant 0 : index
    %c0_6 = arith.constant 0 : index
    %7 = vector.load %arg3[%c0_4, %c0_5, %c0_6] : memref<1x2x128xf32, #tpu.memory_space<vmem>>, vector<1x2x128xf32>
    %8 = vector.shape_cast %7 : vector<1x2x128xf32> to vector<2x128xf32>
    %9 = vector.extract_strided_slice %8 {offsets = [0, 0], sizes = [1, 128], strides = [1, 1]} : vector<2x128xf32> to vector<1x128xf32>
    %10 = vector.broadcast %9 : vector<1x128xf32> to vector<16x128xf32>
    %11 = arith.mulf %10, %2 : vector<16x128xf32>
    %12 = arith.addf %6, %11 : vector<16x128xf32>
    %13 = vector.extract_strided_slice %8 {offsets = [1, 0], sizes = [1, 128], strides = [1, 1]} : vector<2x128xf32> to vector<1x128xf32>
    %14 = vector.broadcast %13 : vector<1x128xf32> to vector<16x128xf32>
    %15 = arith.addf %12, %14 : vector<16x128xf32>
    %16 = vector.extract_strided_slice %3 {offsets = [1, 0], sizes = [1, 128], strides = [1, 1]} : vector<3x128xf32> to vector<1x128xf32>
    %17 = vector.broadcast %16 : vector<1x128xf32> to vector<16x128xf32>
    %18 = arith.mulf %17, %15 : vector<16x128xf32>
    %19 = arith.truncf %18 : vector<16x128xf32> to vector<16x128xbf16>
    %c0_7 = arith.constant 0 : index
    %c0_8 = arith.constant 0 : index
    %c0_9 = arith.constant 0 : index
    %20 = vector.load %arg5[%c0_7, %c0_8, %c0_9] : memref<1x16x128xbf16, #tpu.memory_space<vmem>>, vector<1x16x128xbf16>
    %21 = vector.shape_cast %20 : vector<1x16x128xbf16> to vector<16x128xbf16>
    %22 = vector.shape_cast %19 : vector<16x128xbf16> to vector<1x16x128xbf16>
    tpu.vector_store %arg5[%c0_7, %c0_8, %c0_9], %22 {strides = array<i32>} : memref<1x16x128xbf16, #tpu.memory_space<vmem>>, vector<1x16x128xbf16>,
    %c0_i32 = arith.constant 0 : i32
    %23 = arith.cmpi eq, %arg1, %c0_i32 : i32
    %24 = arith.extui %23 : i1 to i32
    %c0_i32_10 = arith.constant 0 : i32
    %25 = arith.cmpi ne, %24, %c0_i32_10 : i32
    scf.if %25 {
      %cst_24 = arith.constant 0.000000e+00 : f32
      %43 = vector.broadcast %cst_24 : f32 to vector<1x1x128xf32>
      %c0_25 = arith.constant 0 : index
      %c0_26 = arith.constant 0 : index
      %c0_27 = arith.constant 0 : index
      %44 = vector.load %arg6[%c0_25, %c0_26, %c0_27] : memref<1x1x128xf32, #tpu.memory_space<vmem>>, vector<1x1x128xf32>
      tpu.vector_store %arg6[%c0_25, %c0_26, %c0_27], %43 {strides = array<i32>} : memref<1x1x128xf32, #tpu.memory_space<vmem>>, vector<1x1x128xf32>,
      %cst_28 = arith.constant 0.000000e+00 : f32
      %45 = vector.broadcast %cst_28 : f32 to vector<1x1x128xf32>
      %c0_29 = arith.constant 0 : index
      %c0_30 = arith.constant 0 : index
      %c0_31 = arith.constant 0 : index
      %46 = vector.load %arg7[%c0_29, %c0_30, %c0_31] : memref<1x1x128xf32, #tpu.memory_space<vmem>>, vector<1x1x128xf32>
      tpu.vector_store %arg7[%c0_29, %c0_30, %c0_31], %45 {strides = array<i32>} : memref<1x1x128xf32, #tpu.memory_space<vmem>>, vector<1x1x128xf32>,
    } else {
    }
    %c0_11 = arith.constant 0 : index
    %c0_12 = arith.constant 0 : index
    %c0_13 = arith.constant 0 : index
    %26 = vector.load %arg6[%c0_11, %c0_12, %c0_13] : memref<1x1x128xf32, #tpu.memory_space<vmem>>, vector<1x1x128xf32>
    %27 = vector.shape_cast %26 : vector<1x1x128xf32> to vector<1x128xf32>
    %cst = arith.constant dense<0.000000e+00> : vector<128xf32>
    %28 = vector.multi_reduction <add>, %18, %cst [0] : vector<16x128xf32> to vector<128xf32>
    %29 = vector.shape_cast %28 : vector<128xf32> to vector<1x128xf32>
    %30 = arith.addf %27, %29 : vector<1x128xf32>
    %c0_14 = arith.constant 0 : index
    %c0_15 = arith.constant 0 : index
    %c0_16 = arith.constant 0 : index
    %31 = vector.load %arg6[%c0_14, %c0_15, %c0_16] : memref<1x1x128xf32, #tpu.memory_space<vmem>>, vector<1x1x128xf32>
    %32 = vector.shape_cast %31 : vector<1x1x128xf32> to vector<1x128xf32>
    %33 = vector.shape_cast %30 : vector<1x128xf32> to vector<1x1x128xf32>
    tpu.vector_store %arg6[%c0_14, %c0_15, %c0_16], %33 {strides = array<i32>} : memref<1x1x128xf32, #tpu.memory_space<vmem>>, vector<1x1x128xf32>,
    %c0_17 = arith.constant 0 : index
    %c0_18 = arith.constant 0 : index
    %c0_19 = arith.constant 0 : index
    %34 = vector.load %arg7[%c0_17, %c0_18, %c0_19] : memref<1x1x128xf32, #tpu.memory_space<vmem>>, vector<1x1x128xf32>
    %35 = vector.shape_cast %34 : vector<1x1x128xf32> to vector<1x128xf32>
    %36 = arith.mulf %18, %18 : vector<16x128xf32>
    %cst_20 = arith.constant dense<0.000000e+00> : vector<128xf32>
    %37 = vector.multi_reduction <add>, %36, %cst_20 [0] : vector<16x128xf32> to vector<128xf32>
    %38 = vector.shape_cast %37 : vector<128xf32> to vector<1x128xf32>
    %39 = arith.addf %35, %38 : vector<1x128xf32>
    %c0_21 = arith.constant 0 : index
    %c0_22 = arith.constant 0 : index
    %c0_23 = arith.constant 0 : index
    %40 = vector.load %arg7[%c0_21, %c0_22, %c0_23] : memref<1x1x128xf32, #tpu.memory_space<vmem>>, vector<1x1x128xf32>
    %41 = vector.shape_cast %40 : vector<1x1x128xf32> to vector<1x128xf32>
    %42 = vector.shape_cast %39 : vector<1x128xf32> to vector<1x1x128xf32>
    tpu.vector_store %arg7[%c0_21, %c0_22, %c0_23], %42 {strides = array<i32>} : memref<1x1x128xf32, #tpu.memory_space<vmem>>, vector<1x1x128xf32>,
    return
  }
  func.func @transform_0(%arg0: i32, %arg1: i32) -> (i32, i32, i32) {
    %c0_i32 = arith.constant 0 : i32
    %c0_i32_0 = arith.constant 0 : i32
    return %arg0, %arg1, %c0_i32 : i32, i32, i32
  }
  func.func @transform_1(%arg0: i32, %arg1: i32) -> (i32, i32, i32) {
    %c0_i32 = arith.constant 0 : i32
    %c0_i32_0 = arith.constant 0 : i32
    %c0_i32_1 = arith.constant 0 : i32
    return %arg0, %c0_i32, %c0_i32_0 : i32, i32, i32
  }
  func.func @transform_2(%arg0: i32, %arg1: i32) -> (i32, i32) {
    %c0_i32 = arith.constant 0 : i32
    %c0_i32_0 = arith.constant 0 : i32
    %c0_i32_1 = arith.constant 0 : i32
    return %c0_i32, %c0_i32_0 : i32, i32
  }
  func.func @transform_3(%arg0: i32, %arg1: i32) -> (i32, i32, i32) {
    %c0_i32 = arith.constant 0 : i32
    %c0_i32_0 = arith.constant 0 : i32
    return %arg0, %arg1, %c0_i32 : i32, i32, i32
  }
  func.func @transform_4(%arg0: i32, %arg1: i32) -> (i32, i32, i32) {
    %c0_i32 = arith.constant 0 : i32
    %c0_i32_0 = arith.constant 0 : i32
    %c0_i32_1 = arith.constant 0 : i32
    return %arg0, %c0_i32, %c0_i32_0 : i32, i32, i32
  }
  func.func @transform_5(%arg0: i32, %arg1: i32) -> (i32, i32, i32) {
    %c0_i32 = arith.constant 0 : i32
    %c0_i32_0 = arith.constant 0 : i32
    %c0_i32_1 = arith.constant 0 : i32
    return %arg0, %c0_i32, %c0_i32_0 : i32, i32, i32
  }
}

module attributes {stable_mosaic.version = 11 : i64} {
  func.func @kernel(%arg0: i32, %arg1: i32, %arg2: memref<1x16x128xbf16, #tpu.memory_space<vmem>>, %arg3: memref<3x128xf32, #tpu.memory_space<vmem>>, %arg4: memref<128x128xbf16, #tpu.memory_space<vmem>>, %arg5: memref<3x128xf32, #tpu.memory_space<vmem>>, %arg6: memref<1x16x128xbf16, #tpu.memory_space<vmem>>, %arg7: memref<1x16x128xbf16, #tpu.memory_space<vmem>>, %arg8: memref<1x16x128xbf16, #tpu.memory_space<vmem>>) attributes {dimension_semantics = [#tpu.dimension_semantics<parallel>, #tpu.dimension_semantics<parallel>], iteration_bounds = array<i64: 2, 1>, scalar_prefetch = 0 : i64, scratch_operands = 0 : i64, tpu.core_type = #tpu.core_type<tc>, window_params = [{transform_indices = @transform_0, window_bounds = array<i64: 1, 16, 128>}, {pipeline_mode = #tpu.pipeline_mode<synchronous>, transform_indices = @transform_1, window_bounds = array<i64: 3, 128>}, {pipeline_mode = #tpu.pipeline_mode<synchronous>, transform_indices = @transform_2, window_bounds = array<i64: 128, 128>}, {pipeline_mode = #tpu.pipeline_mode<synchronous>, transform_indices = @transform_3, window_bounds = array<i64: 3, 128>}, {transform_indices = @transform_4, window_bounds = array<i64: 1, 16, 128>}, {transform_indices = @transform_5, window_bounds = array<i64: 1, 16, 128>}, {transform_indices = @transform_6, window_bounds = array<i64: 1, 16, 128>}]} {
    %c0 = arith.constant 0 : index
    %c0_0 = arith.constant 0 : index
    %c0_1 = arith.constant 0 : index
    %0 = vector.load %arg2[%c0, %c0_0, %c0_1] : memref<1x16x128xbf16, #tpu.memory_space<vmem>>, vector<1x16x128xbf16>
    %1 = vector.shape_cast %0 : vector<1x16x128xbf16> to vector<16x128xbf16>
    %2 = arith.extf %1 : vector<16x128xbf16> to vector<16x128xf32>
    %c0_2 = arith.constant 0 : index
    %c0_3 = arith.constant 0 : index
    %3 = vector.load %arg3[%c0_2, %c0_3] : memref<3x128xf32, #tpu.memory_space<vmem>>, vector<3x128xf32>
    %4 = vector.extract_strided_slice %3 {offsets = [0, 0], sizes = [1, 128], strides = [1, 1]} : vector<3x128xf32> to vector<1x128xf32>
    %5 = vector.broadcast %4 : vector<1x128xf32> to vector<16x128xf32>
    %6 = arith.mulf %5, %2 : vector<16x128xf32>
    %7 = vector.extract_strided_slice %3 {offsets = [1, 0], sizes = [1, 128], strides = [1, 1]} : vector<3x128xf32> to vector<1x128xf32>
    %8 = vector.broadcast %7 : vector<1x128xf32> to vector<16x128xf32>
    %9 = arith.mulf %8, %6 : vector<16x128xf32>
    %10 = vector.extract_strided_slice %3 {offsets = [2, 0], sizes = [1, 128], strides = [1, 1]} : vector<3x128xf32> to vector<1x128xf32>
    %cst = arith.constant 5.000000e-01 : f32
    %11 = vector.broadcast %cst : f32 to vector<16x128xf32>
    %12 = arith.mulf %11, %6 : vector<16x128xf32>
    %cst_4 = arith.constant 4.471500e-02 : f32
    %13 = vector.broadcast %cst_4 : f32 to vector<16x128xf32>
    %14 = arith.mulf %13, %6 : vector<16x128xf32>
    %15 = arith.mulf %14, %6 : vector<16x128xf32>
    %16 = arith.mulf %15, %6 : vector<16x128xf32>
    %17 = arith.addf %6, %16 : vector<16x128xf32>
    %cst_5 = arith.constant 0.797884583 : f32
    %18 = vector.broadcast %cst_5 : f32 to vector<16x128xf32>
    %19 = arith.mulf %18, %17 : vector<16x128xf32>
    %20 = math.tanh %19 : vector<16x128xf32>
    %cst_6 = arith.constant 1.000000e+00 : f32
    %21 = vector.broadcast %cst_6 : f32 to vector<16x128xf32>
    %22 = arith.addf %21, %20 : vector<16x128xf32>
    %23 = arith.mulf %12, %22 : vector<16x128xf32>
    %24 = vector.broadcast %10 : vector<1x128xf32> to vector<16x128xf32>
    %25 = arith.mulf %24, %23 : vector<16x128xf32>
    %26 = arith.addf %9, %25 : vector<16x128xf32>
    %c0_7 = arith.constant 0 : index
    %c0_8 = arith.constant 0 : index
    %27 = vector.load %arg5[%c0_7, %c0_8] : memref<3x128xf32, #tpu.memory_space<vmem>>, vector<3x128xf32>
    %28 = arith.truncf %26 : vector<16x128xf32> to vector<16x128xbf16>
    %c0_9 = arith.constant 0 : index
    %c0_10 = arith.constant 0 : index
    %29 = vector.load %arg4[%c0_9, %c0_10] : memref<128x128xbf16, #tpu.memory_space<vmem>>, vector<128x128xbf16>
    %cst_11 = arith.constant dense<0.000000e+00> : vector<16x128xf32>
    %30 = tpu.matmul %28, %29, %cst_11 {dimension_numbers = #tpu.dot_dimension_numbers<[1], [0], [0], [1], [0, 0, 1, 1], [], []>} : vector<16x128xbf16>, vector<128x128xbf16>, vector<16x128xf32> -> vector<16x128xf32>
    %31 = vector.extract_strided_slice %27 {offsets = [0, 0], sizes = [1, 128], strides = [1, 1]} : vector<3x128xf32> to vector<1x128xf32>
    %32 = vector.broadcast %31 : vector<1x128xf32> to vector<16x128xf32>
    %33 = arith.addf %30, %32 : vector<16x128xf32>
    %34 = vector.extract_strided_slice %27 {offsets = [1, 0], sizes = [1, 128], strides = [1, 1]} : vector<3x128xf32> to vector<1x128xf32>
    %c0_12 = arith.constant 0 : index
    %c0_13 = arith.constant 0 : index
    %c0_14 = arith.constant 0 : index
    %35 = vector.load %arg6[%c0_12, %c0_13, %c0_14] : memref<1x16x128xbf16, #tpu.memory_space<vmem>>, vector<1x16x128xbf16>
    %36 = vector.shape_cast %35 : vector<1x16x128xbf16> to vector<16x128xbf16>
    %37 = arith.extf %36 : vector<16x128xbf16> to vector<16x128xf32>
    %38 = vector.broadcast %34 : vector<1x128xf32> to vector<16x128xf32>
    %39 = arith.mulf %38, %37 : vector<16x128xf32>
    %40 = arith.addf %33, %39 : vector<16x128xf32>
    %41 = vector.extract_strided_slice %27 {offsets = [2, 0], sizes = [1, 128], strides = [1, 1]} : vector<3x128xf32> to vector<1x128xf32>
    %c0_15 = arith.constant 0 : index
    %c0_16 = arith.constant 0 : index
    %c0_17 = arith.constant 0 : index
    %42 = vector.load %arg7[%c0_15, %c0_16, %c0_17] : memref<1x16x128xbf16, #tpu.memory_space<vmem>>, vector<1x16x128xbf16>
    %43 = vector.shape_cast %42 : vector<1x16x128xbf16> to vector<16x128xbf16>
    %44 = arith.extf %43 : vector<16x128xbf16> to vector<16x128xf32>
    %45 = vector.broadcast %41 : vector<1x128xf32> to vector<16x128xf32>
    %46 = arith.mulf %45, %44 : vector<16x128xf32>
    %47 = arith.addf %40, %46 : vector<16x128xf32>
    %48 = arith.truncf %47 : vector<16x128xf32> to vector<16x128xbf16>
    %c0_18 = arith.constant 0 : index
    %c0_19 = arith.constant 0 : index
    %c0_20 = arith.constant 0 : index
    %49 = vector.load %arg8[%c0_18, %c0_19, %c0_20] : memref<1x16x128xbf16, #tpu.memory_space<vmem>>, vector<1x16x128xbf16>
    %50 = vector.shape_cast %49 : vector<1x16x128xbf16> to vector<16x128xbf16>
    %51 = vector.shape_cast %48 : vector<16x128xbf16> to vector<1x16x128xbf16>
    tpu.vector_store %arg8[%c0_18, %c0_19, %c0_20], %51 {strides = array<i32>} : memref<1x16x128xbf16, #tpu.memory_space<vmem>>, vector<1x16x128xbf16>,
    return
  }
  func.func @transform_0(%arg0: i32, %arg1: i32) -> (i32, i32, i32) {
    %c0_i32 = arith.constant 0 : i32
    %c0_i32_0 = arith.constant 0 : i32
    return %arg0, %arg1, %c0_i32 : i32, i32, i32
  }
  func.func @transform_1(%arg0: i32, %arg1: i32) -> (i32, i32) {
    %c0_i32 = arith.constant 0 : i32
    %c0_i32_0 = arith.constant 0 : i32
    %c0_i32_1 = arith.constant 0 : i32
    return %c0_i32, %c0_i32_0 : i32, i32
  }
  func.func @transform_2(%arg0: i32, %arg1: i32) -> (i32, i32) {
    %c0_i32 = arith.constant 0 : i32
    %c0_i32_0 = arith.constant 0 : i32
    %c0_i32_1 = arith.constant 0 : i32
    return %c0_i32, %c0_i32_0 : i32, i32
  }
  func.func @transform_3(%arg0: i32, %arg1: i32) -> (i32, i32) {
    %c0_i32 = arith.constant 0 : i32
    %c0_i32_0 = arith.constant 0 : i32
    %c0_i32_1 = arith.constant 0 : i32
    return %c0_i32, %c0_i32_0 : i32, i32
  }
  func.func @transform_4(%arg0: i32, %arg1: i32) -> (i32, i32, i32) {
    %c0_i32 = arith.constant 0 : i32
    %c0_i32_0 = arith.constant 0 : i32
    return %arg0, %arg1, %c0_i32 : i32, i32, i32
  }
  func.func @transform_5(%arg0: i32, %arg1: i32) -> (i32, i32, i32) {
    %c0_i32 = arith.constant 0 : i32
    %c0_i32_0 = arith.constant 0 : i32
    return %arg0, %arg1, %c0_i32 : i32, i32, i32
  }
  func.func @transform_6(%arg0: i32, %arg1: i32) -> (i32, i32, i32) {
    %c0_i32 = arith.constant 0 : i32
    %c0_i32_0 = arith.constant 0 : i32
    return %arg0, %arg1, %c0_i32 : i32, i32, i32
  }
}

module attributes {stable_mosaic.version = 11 : i64} {
  func.func @kernel(%arg0: i32, %arg1: i32, %arg2: memref<1x16x128xbf16, #tpu.memory_space<vmem>>, %arg3: memref<1x2x128xf32, #tpu.memory_space<vmem>>, %arg4: memref<6x128xf32, #tpu.memory_space<vmem>>, %arg5: memref<1x16x128xbf16, #tpu.memory_space<vmem>>, %arg6: memref<1x16x128xbf16, #tpu.memory_space<vmem>>, %arg7: memref<1x16x128xbf16, #tpu.memory_space<vmem>>, %arg8: memref<1x16x128xbf16, #tpu.memory_space<vmem>>) attributes {dimension_semantics = [#tpu.dimension_semantics<parallel>, #tpu.dimension_semantics<parallel>], iteration_bounds = array<i64: 2, 1>, scalar_prefetch = 0 : i64, scratch_operands = 0 : i64, tpu.core_type = #tpu.core_type<tc>, window_params = [{transform_indices = @transform_0, window_bounds = array<i64: 1, 16, 128>}, {transform_indices = @transform_1, window_bounds = array<i64: 1, 2, 128>}, {pipeline_mode = #tpu.pipeline_mode<synchronous>, transform_indices = @transform_2, window_bounds = array<i64: 6, 128>}, {transform_indices = @transform_3, window_bounds = array<i64: 1, 16, 128>}, {transform_indices = @transform_4, window_bounds = array<i64: 1, 16, 128>}, {transform_indices = @transform_5, window_bounds = array<i64: 1, 16, 128>}, {transform_indices = @transform_6, window_bounds = array<i64: 1, 16, 128>}]} {
    %c0 = arith.constant 0 : index
    %c0_0 = arith.constant 0 : index
    %c0_1 = arith.constant 0 : index
    %0 = vector.load %arg2[%c0, %c0_0, %c0_1] : memref<1x16x128xbf16, #tpu.memory_space<vmem>>, vector<1x16x128xbf16>
    %1 = vector.shape_cast %0 : vector<1x16x128xbf16> to vector<16x128xbf16>
    %2 = arith.extf %1 : vector<16x128xbf16> to vector<16x128xf32>
    %c0_2 = arith.constant 0 : index
    %c0_3 = arith.constant 0 : index
    %3 = vector.load %arg4[%c0_2, %c0_3] : memref<6x128xf32, #tpu.memory_space<vmem>>, vector<6x128xf32>
    %4 = vector.extract_strided_slice %3 {offsets = [0, 0], sizes = [1, 128], strides = [1, 1]} : vector<6x128xf32> to vector<1x128xf32>
    %5 = vector.broadcast %4 : vector<1x128xf32> to vector<16x128xf32>
    %6 = arith.mulf %5, %2 : vector<16x128xf32>
    %c0_4 = arith.constant 0 : index
    %c0_5 = arith.constant 0 : index
    %c0_6 = arith.constant 0 : index
    %7 = vector.load %arg3[%c0_4, %c0_5, %c0_6] : memref<1x2x128xf32, #tpu.memory_space<vmem>>, vector<1x2x128xf32>
    %8 = vector.shape_cast %7 : vector<1x2x128xf32> to vector<2x128xf32>
    %9 = vector.extract_strided_slice %8 {offsets = [0, 0], sizes = [1, 128], strides = [1, 1]} : vector<2x128xf32> to vector<1x128xf32>
    %10 = vector.broadcast %9 : vector<1x128xf32> to vector<16x128xf32>
    %11 = arith.mulf %10, %2 : vector<16x128xf32>
    %12 = arith.addf %6, %11 : vector<16x128xf32>
    %13 = vector.extract_strided_slice %8 {offsets = [1, 0], sizes = [1, 128], strides = [1, 1]} : vector<2x128xf32> to vector<1x128xf32>
    %14 = vector.broadcast %13 : vector<1x128xf32> to vector<16x128xf32>
    %15 = arith.addf %12, %14 : vector<16x128xf32>
    %16 = vector.extract_strided_slice %3 {offsets = [1, 0], sizes = [1, 128], strides = [1, 1]} : vector<6x128xf32> to vector<1x128xf32>
    %17 = vector.broadcast %16 : vector<1x128xf32> to vector<16x128xf32>
    %18 = arith.mulf %17, %15 : vector<16x128xf32>
    %19 = vector.extract_strided_slice %3 {offsets = [2, 0], sizes = [1, 128], strides = [1, 1]} : vector<6x128xf32> to vector<1x128xf32>
    %cst = arith.constant 5.000000e-01 : f32
    %20 = vector.broadcast %cst : f32 to vector<16x128xf32>
    %21 = arith.mulf %20, %15 : vector<16x128xf32>
    %cst_7 = arith.constant 4.471500e-02 : f32
    %22 = vector.broadcast %cst_7 : f32 to vector<16x128xf32>
    %23 = arith.mulf %22, %15 : vector<16x128xf32>
    %24 = arith.mulf %23, %15 : vector<16x128xf32>
    %25 = arith.mulf %24, %15 : vector<16x128xf32>
    %26 = arith.addf %15, %25 : vector<16x128xf32>
    %cst_8 = arith.constant 0.797884583 : f32
    %27 = vector.broadcast %cst_8 : f32 to vector<16x128xf32>
    %28 = arith.mulf %27, %26 : vector<16x128xf32>
    %29 = math.tanh %28 : vector<16x128xf32>
    %cst_9 = arith.constant 1.000000e+00 : f32
    %30 = vector.broadcast %cst_9 : f32 to vector<16x128xf32>
    %31 = arith.addf %30, %29 : vector<16x128xf32>
    %32 = arith.mulf %21, %31 : vector<16x128xf32>
    %33 = vector.broadcast %19 : vector<1x128xf32> to vector<16x128xf32>
    %34 = arith.mulf %33, %32 : vector<16x128xf32>
    %35 = arith.addf %18, %34 : vector<16x128xf32>
    %36 = vector.extract_strided_slice %3 {offsets = [3, 0], sizes = [1, 128], strides = [1, 1]} : vector<6x128xf32> to vector<1x128xf32>
    %c0_10 = arith.constant 0 : index
    %c0_11 = arith.constant 0 : index
    %c0_12 = arith.constant 0 : index
    %37 = vector.load %arg5[%c0_10, %c0_11, %c0_12] : memref<1x16x128xbf16, #tpu.memory_space<vmem>>, vector<1x16x128xbf16>
    %38 = vector.shape_cast %37 : vector<1x16x128xbf16> to vector<16x128xbf16>
    %39 = arith.extf %38 : vector<16x128xbf16> to vector<16x128xf32>
    %40 = vector.broadcast %36 : vector<1x128xf32> to vector<16x128xf32>
    %41 = arith.mulf %40, %39 : vector<16x128xf32>
    %42 = arith.addf %35, %41 : vector<16x128xf32>
    %43 = vector.extract_strided_slice %3 {offsets = [4, 0], sizes = [1, 128], strides = [1, 1]} : vector<6x128xf32> to vector<1x128xf32>
    %c0_13 = arith.constant 0 : index
    %c0_14 = arith.constant 0 : index
    %c0_15 = arith.constant 0 : index
    %44 = vector.load %arg6[%c0_13, %c0_14, %c0_15] : memref<1x16x128xbf16, #tpu.memory_space<vmem>>, vector<1x16x128xbf16>
    %45 = vector.shape_cast %44 : vector<1x16x128xbf16> to vector<16x128xbf16>
    %46 = arith.extf %45 : vector<16x128xbf16> to vector<16x128xf32>
    %47 = vector.broadcast %43 : vector<1x128xf32> to vector<16x128xf32>
    %48 = arith.mulf %47, %46 : vector<16x128xf32>
    %49 = arith.addf %42, %48 : vector<16x128xf32>
    %50 = vector.extract_strided_slice %3 {offsets = [5, 0], sizes = [1, 128], strides = [1, 1]} : vector<6x128xf32> to vector<1x128xf32>
    %c0_16 = arith.constant 0 : index
    %c0_17 = arith.constant 0 : index
    %c0_18 = arith.constant 0 : index
    %51 = vector.load %arg7[%c0_16, %c0_17, %c0_18] : memref<1x16x128xbf16, #tpu.memory_space<vmem>>, vector<1x16x128xbf16>
    %52 = vector.shape_cast %51 : vector<1x16x128xbf16> to vector<16x128xbf16>
    %53 = arith.extf %52 : vector<16x128xbf16> to vector<16x128xf32>
    %54 = vector.broadcast %50 : vector<1x128xf32> to vector<16x128xf32>
    %55 = arith.mulf %54, %53 : vector<16x128xf32>
    %56 = arith.addf %49, %55 : vector<16x128xf32>
    %57 = arith.truncf %56 : vector<16x128xf32> to vector<16x128xbf16>
    %c0_19 = arith.constant 0 : index
    %c0_20 = arith.constant 0 : index
    %c0_21 = arith.constant 0 : index
    %58 = vector.load %arg8[%c0_19, %c0_20, %c0_21] : memref<1x16x128xbf16, #tpu.memory_space<vmem>>, vector<1x16x128xbf16>
    %59 = vector.shape_cast %58 : vector<1x16x128xbf16> to vector<16x128xbf16>
    %60 = vector.shape_cast %57 : vector<16x128xbf16> to vector<1x16x128xbf16>
    tpu.vector_store %arg8[%c0_19, %c0_20, %c0_21], %60 {strides = array<i32>} : memref<1x16x128xbf16, #tpu.memory_space<vmem>>, vector<1x16x128xbf16>,
    return
  }
  func.func @transform_0(%arg0: i32, %arg1: i32) -> (i32, i32, i32) {
    %c0_i32 = arith.constant 0 : i32
    %c0_i32_0 = arith.constant 0 : i32
    return %arg0, %arg1, %c0_i32 : i32, i32, i32
  }
  func.func @transform_1(%arg0: i32, %arg1: i32) -> (i32, i32, i32) {
    %c0_i32 = arith.constant 0 : i32
    %c0_i32_0 = arith.constant 0 : i32
    %c0_i32_1 = arith.constant 0 : i32
    return %arg0, %c0_i32, %c0_i32_0 : i32, i32, i32
  }
  func.func @transform_2(%arg0: i32, %arg1: i32) -> (i32, i32) {
    %c0_i32 = arith.constant 0 : i32
    %c0_i32_0 = arith.constant 0 : i32
    %c0_i32_1 = arith.constant 0 : i32
    return %c0_i32, %c0_i32_0 : i32, i32
  }
  func.func @transform_3(%arg0: i32, %arg1: i32) -> (i32, i32, i32) {
    %c0_i32 = arith.constant 0 : i32
    %c0_i32_0 = arith.constant 0 : i32
    return %arg0, %arg1, %c0_i32 : i32, i32, i32
  }
  func.func @transform_4(%arg0: i32, %arg1: i32) -> (i32, i32, i32) {
    %c0_i32 = arith.constant 0 : i32
    %c0_i32_0 = arith.constant 0 : i32
    return %arg0, %arg1, %c0_i32 : i32, i32, i32
  }
  func.func @transform_5(%arg0: i32, %arg1: i32) -> (i32, i32, i32) {
    %c0_i32 = arith.constant 0 : i32
    %c0_i32_0 = arith.constant 0 : i32
    return %arg0, %arg1, %c0_i32 : i32, i32, i32
  }
  func.func @transform_6(%arg0: i32, %arg1: i32) -> (i32, i32, i32) {
    %c0_i32 = arith.constant 0 : i32
    %c0_i32_0 = arith.constant 0 : i32
    return %arg0, %arg1, %c0_i32 : i32, i32, i32
  }
}

</mosaic_0001>

<bundles_post_ra>
// kernel: _lambda_.10
= control target key start
LH: loop header
LB: loop body
LE: loop exit
PB: predicated region body
PF: predicated region fallthrough
CT: control target
= control target key end

     0   :  { %s758_s21 = smov 0   ;;  %s760_s22 = smov 0   ;;  %s847_s0 = inlined_call_operand.vmem [shape: bf16[2,16,128], index: 0, kind: input, shape index: {}]   ;;  %s848_s1 = inlined_call_operand.vmem [shape: f32[2,2,128], index: 1, kind: input, shape index: {}]   ;;  %s849_s2 = inlined_call_operand.vmem [shape: f32[3,128], index: 2, kind: input, shape index: {}]   ;;  %s850_s3 = inlined_call_operand.vmem [shape: bf16[128,128], index: 3, kind: input, shape index: {}]   ;;  %s851_s4 = inlined_call_operand.vmem [shape: bf16[2,16,128], index: 4, kind: output, shape index: {0}]   ;;  %s852_s5 = inlined_call_operand.vmem [shape: f32[2,1,128], index: 5, kind: output, shape index: {1}]   ;;  %s853_s6 = inlined_call_operand.vmem [shape: f32[2,1,128], index: 6, kind: output, shape index: {2}]  }
   0x1   :  { %s762_s23 = smov 0  }
   0x2 LB: > { %s29_s24 = sadd.s32 1, %s716_s22  ;;  %p614_p0 = scmp.ge.s32.totalorder %s720_s23, 1  ;;  %s720_s23 = sphi %s762_s23, %s17_s23   ;;  %s716_s22 = sphi %s760_s22, %s855_s22   ;;  %s712_s21 = sphi %s758_s21, %s854_s21  }
   0x3   : > { %p31_p1 = scmp.ge.s32.totalorder %s29_s24, 2  ;;  %p247_p2 = scmp.lt.s32.totalorder %s720_s23, 3 }
   0x5   : > { %s857_s24 = smov (%p31_p1, %s29_s24), 0  ;;  %p248_p3 = pnand %p614_p0, %p247_p2 }
   0x6   : > { %p296_p4 = scmp.lt.s32.totalorder (!%p248_p3), %s712_s21, 1 }
   0x7   : > { %251 = sbr.rel (%p248_p3) target bundleno = 201 (0xc9), region = 36 }
   0xc   : > { %v663_v0 = vld [vmem:[%s850_s3 + $0x38] sm:$0xff]  ;;  %v662_v1 = vld [vmem:[%s850_s3 + $0x30] sm:$0xff]  ;;  %s859_s21 = smov (!%p296_p4, %s712_s21), 1  ;;  %v661_v2 = vld [vmem:[%s850_s3 + $0x28] sm:$0xff]  ;;  %v722_v25 = vmov 0.0  }
   0xd   : > { %410 = vmatpush.bf16.msra.mxu0 %v663_v0  ;;  %s654_s29 = sshll.u32 %s859_s21, 3  ;;  %s617_s30 = sshll.u32 %s859_s21, 1  ;;  %v660_v3 = vld [vmem:[%s850_s3 + $0x20] sm:$0xff]  ;;  %v659_v11 = vld [vmem:[%s850_s3 + $0x18] sm:$0xff]  ;;  %v658_v16 = vld [vmem:[%s850_s3 + $0x10] sm:$0xff] }
   0xe   : > { %s303_s11 = scalar_lea.vmem %s847_s0, %s654_s29  ;;  %s308_s14 = scalar_lea.vmem %s848_s1, %s617_s30  ;;  %v329_v5 = vld [vmem:[%s849_s2] sm:$0x7]  ;;  %v657_v20 = vld [vmem:[%s850_s3 + $0x8] sm:$0xff] }
   0xf   : > { %v665_v4 = vld [vmem:[%s303_s11] sm:$0xff]   ;;  %v330_v9 = vperm.slane %v329_v5, 0  ;;  %s819_s10 = scalar_lea.vmem %s852_s5, %s859_s21  ;;  %s825_s13 = scalar_lea.vmem %s853_s6, %s859_s21  ;;  %v342_v26 = vperm.slane %v329_v5, 1  ;;  %v426_v30 = vperm.slane %v329_v5, 2 }
  0x10   : > { %v333_v6 = vld [vmem:[%s308_s14] sm:$0x3]  ;;  %v666_v7 = vunpack.c.l.bf16 %v665_v4  ;;  %v667_v8 = vunpack.c.h.bf16 %v665_v4  ;;  %437 = vst [vmem:[%s819_s10] sm:$0x1] %v722_v25  ;;  %s317_s16 = scalar_lea.vmem %s851_s4, %s654_s29 }
  0x11   : > { %411 = vmatpush.bf16.msra.mxu0 %v662_v1  ;;  %v334_v10 = vperm.slane %v333_v6, 0  ;;  %v339_v19 = vperm.slane %v333_v6, 1  ;;  %v656_v23 = vld [vmem:[%s850_s3] sm:$0xff]  ;;  %438 = vst [vmem:[%s825_s13] sm:$0x1] %v722_v25 }
  0x12   : > { %v331_v12 = vmul.f32 %v666_v7, %v330_v9  ;;  %v332_v13 = vmul.f32 %v667_v8, %v330_v9 }
  0x13   : > { %v335_v14 = vmul.f32 %v666_v7, %v334_v10  ;;  %v336_v15 = vmul.f32 %v667_v8, %v334_v10 }
  0x15   : > { %412 = vmatpush.bf16.msra.mxu0 %v661_v2  ;;  %v337_v17 = vadd.f32 %v335_v14, %v331_v12  ;;  %v338_v18 = vadd.f32 %v336_v15, %v332_v13 }
  0x17   : > { %v340_v21 = vadd.f32 %v339_v19, %v337_v17  ;;  %v341_v22 = vadd.f32 %v339_v19, %v338_v18  ;;  %v439_v50 = vld [vmem:[%s819_s10] sm:$0x1] }
  0x18   : > { %v449_v53 = vld [vmem:[%s825_s13] sm:$0x1] }
  0x19   : > { %413 = vmatpush.bf16.msra.mxu0 %v660_v3  ;;  %v345_v24 = vpack.c.bf16 %v341_v22, %v340_v21  ;;  %v343_v28 = vmul.f32 %v342_v26, %v340_v21  ;;  %v344_v31 = vmul.f32 %v342_v26, %v341_v22 }
  0x1d   : > { %414 = vmatpush.bf16.msra.mxu0 %v659_v11 }
  0x21   : > { %415 = vmatpush.bf16.msra.mxu0 %v658_v16 }
  0x25   : > { %416 = vmatpush.bf16.msra.mxu0 %v657_v20 }
  0x29   : > { %417 = vmatpush.bf16.msra.mxu0 %v656_v23 }
  0x2c   : > { %418 = vmatmul.bf16.vlgmr.msra.gmra.mxu0 %v345_v24 }
  0xa9   : > { %v419_v27 = vpop.f32.mrf.mxu0 }
  0xaa   : > { %v424_v29 = vadd.f32 %v419_v27, %v343_v28 }
  0xac   : > { %v427_v33 = vadd.f32 %v426_v30, %v424_v29 }
  0xae   : > { %v450_v36 = vmul.f32 %v427_v33, %v427_v33 }
  0xb1   : > { %v421_v32 = vpop.f32.mrf.mxu0 }
  0xb2   : > { %v425_v34 = vadd.f32 %v421_v32, %v344_v31 }
  0xb4   : > { %v428_v35 = vadd.f32 %v426_v30, %v425_v34 }
  0xb6   : > { %v671_v37 = vpack.c.bf16 %v428_v35, %v427_v33  ;;  %v440_v38 = vadd.f32 %v428_v35, %v427_v33  ;;  %v451_v39 = vmul.f32 %v428_v35, %v428_v35 }
  0xb8   : > { %672 = vst [vmem:[%s317_s16] sm:$0xff] %v671_v37   ;;  %v441_v40 = vrot.slane %v440_v38, 4  ;;  %v452_v41 = vadd.f32 %v451_v39, %v450_v36 }
  0xba   : > { %v442_v42 = vadd.f32 %v441_v40, %v440_v38  ;;  %v453_v43 = vrot.slane %v452_v41, 4 }
  0xbc   : > { %v443_v44 = vrot.slane %v442_v42, 2  ;;  %v454_v45 = vadd.f32 %v453_v43, %v452_v41 }
  0xbe   : > { %v444_v46 = vadd.f32 %v443_v44, %v442_v42  ;;  %v455_v47 = vrot.slane %v454_v45, 2 }
  0xc0   : > { %v445_v48 = vrot.slane %v444_v46, 1  ;;  %v456_v49 = vadd.f32 %v455_v47, %v454_v45 }
  0xc2   : > { %v446_v51 = vadd.f32 %v445_v48, %v444_v46  ;;  %v457_v52 = vrot.slane %v456_v49, 1 }
  0xc4   : > { %v447_v54 = vadd.f32 %v446_v51, %v439_v50  ;;  %v458_v55 = vadd.f32 %v457_v52, %v456_v49 }
  0xc6   : > { %448 = vst [vmem:[%s819_s10] sm:$0x1] %v447_v54  ;;  %v459_v56 = vadd.f32 %v458_v55, %v449_v53 }
  0xc8   : > { %460 = vst [vmem:[%s825_s13] sm:$0x1] %v459_v56 }
  0xc9 PF: > { %s17_s23 = sadd.s32 1, %s720_s23   ;;  %s854_s21 = smov %s716_s22 }
  0xca   : > { %p14_p5 = scmp.ge.s32.totalorder %s17_s23, 4   ;;  %s855_s22 = smov %s857_s24 }
  0xcc   :  { %16 = sbr.rel (!%p14_p5) target bundleno = 2 (0x2), region = 97 }

// kernel: _lambda_.9
= control target key start
LH: loop header
LB: loop body
LE: loop exit
PB: predicated region body
PF: predicated region fallthrough
CT: control target
= control target key end

     0   :  { %s555_s15 = smov 0   ;;  %s557_s16 = smov 0   ;;  %s616_s0 = inlined_call_operand.vmem [shape: bf16[2,16,128], index: 0, kind: input, shape index: {}]   ;;  %s617_s1 = inlined_call_operand.vmem [shape: f32[2,128], index: 1, kind: input, shape index: {}]   ;;  %s618_s2 = inlined_call_operand.vmem [shape: bf16[2,16,128], index: 2, kind: output, shape index: {0}]   ;;  %s619_s3 = inlined_call_operand.vmem [shape: f32[2,1,128], index: 3, kind: output, shape index: {1}]   ;;  %s620_s4 = inlined_call_operand.vmem [shape: f32[2,1,128], index: 4, kind: output, shape index: {2}]  }
   0x1   :  { %s559_s17 = smov 0  }
   0x2 LB: > { %s27_s18 = sadd.s32 1, %s523_s16  ;;  %p458_p0 = scmp.ge.s32.totalorder %s527_s17, 1  ;;  %s527_s17 = sphi %s559_s17, %s15_s17   ;;  %s523_s16 = sphi %s557_s16, %s622_s16   ;;  %s519_s15 = sphi %s555_s15, %s621_s15  }
   0x3   : > { %p29_p1 = scmp.ge.s32.totalorder %s27_s18, 2  ;;  %p188_p2 = scmp.lt.s32.totalorder %s527_s17, 3 }
   0x5   : > { %s624_s18 = smov (%p29_p1, %s27_s18), 0  ;;  %p189_p3 = pnand %p458_p0, %p188_p2 }
   0x6   : > { %p229_p4 = scmp.lt.s32.totalorder (!%p189_p3), %s519_s15, 1 }
   0x7   : > { %192 = sbr.rel (%p189_p3) target bundleno = 64 (0x40), region = 28 }
   0xc   : > { %s626_s15 = smov (!%p229_p4, %s519_s15), 1  ;;  %v529_v0 = vmov 0.0   ;;  %v258_v14 = vld [vmem:[%s617_s1] sm:$0x3] }
   0xd   : > { %s579_s21 = scalar_lea.vmem %s619_s3, %s626_s15  ;;  %s585_s24 = scalar_lea.vmem %s620_s4, %s626_s15  ;;  %v259_v15 = vperm.slane %v258_v14, 0  ;;  %v280_v21 = vperm.slane %v258_v14, 1 }
   0xe   : > { %293 = vst [vmem:[%s579_s21] sm:$0x1] %v529_v0  ;;  %s465_s25 = sshll.u32 %s626_s15, 3 }
   0xf   : > { %294 = vst [vmem:[%s585_s24] sm:$0x1] %v529_v0  ;;  %s236_s28 = scalar_lea.vmem %s616_s0, %s465_s25  ;;  %s246_s7 = scalar_lea.vmem %s618_s2, %s465_s25 }
  0x10   : > { %v468_v1 = vld [vmem:[%s236_s28] sm:$0xff]  }
  0x11   : > { %v469_v2 = vunpack.c.l.bf16 %v468_v1  ;;  %v470_v3 = vunpack.c.h.bf16 %v468_v1 }
  0x13   : > { %v264_v4 = vmul.f32 0.044715, %v469_v2  ;;  %v265_v5 = vmul.f32 0.044715, %v470_v3  ;;  %v262_v16 = vmul.f32 0.5, %v469_v2  ;;  %v263_v18 = vmul.f32 0.5, %v470_v3 }
  0x14   : > { %v260_v23 = vmul.f32 %v469_v2, %v259_v15  ;;  %v261_v25 = vmul.f32 %v470_v3, %v259_v15 }
  0x15   : > { %v266_v6 = vmul.f32 %v469_v2, %v264_v4  ;;  %v267_v7 = vmul.f32 %v470_v3, %v265_v5  ;;  %v295_v45 = vld [vmem:[%s579_s21] sm:$0x1] }
  0x16   : > { %v305_v48 = vld [vmem:[%s585_s24] sm:$0x1] }
  0x17   : > { %v268_v8 = vmul.f32 %v469_v2, %v266_v6  ;;  %v269_v9 = vmul.f32 %v470_v3, %v267_v7 }
  0x19   : > { %v270_v10 = vadd.f32 %v469_v2, %v268_v8  ;;  %v271_v11 = vadd.f32 %v470_v3, %v269_v9 }
  0x1b   : > { %v272_v12 = vmul.f32 0.7978846, %v270_v10  ;;  %v273_v13 = vmul.f32 0.7978846, %v271_v11 }
  0x1d   : > { %501 = vtanh.f32 %v272_v12 }
  0x1e   : > { %503 = vtanh.f32 %v273_v13 }
  0x23   : > { %v502_v17 = vpop.eup %501 }
  0x24   : > { %v504_v19 = vpop.eup %503  ;;  %v276_v20 = vadd.f32 1.0, %v502_v17 }
  0x25   : > { %v277_v22 = vadd.f32 1.0, %v504_v19 }
  0x26   : > { %v278_v24 = vmul.f32 %v276_v20, %v262_v16 }
  0x27   : > { %v279_v26 = vmul.f32 %v277_v22, %v263_v18 }
  0x28   : > { %v281_v27 = vmul.f32 %v280_v21, %v278_v24 }
  0x29   : > { %v282_v28 = vmul.f32 %v280_v21, %v279_v26 }
  0x2a   : > { %v283_v29 = vadd.f32 %v281_v27, %v260_v23 }
  0x2b   : > { %v284_v30 = vadd.f32 %v282_v28, %v261_v25 }
  0x2c   : > { %v306_v31 = vmul.f32 %v283_v29, %v283_v29 }
  0x2d   : > { %v474_v32 = vpack.c.bf16 %v284_v30, %v283_v29  ;;  %v296_v33 = vadd.f32 %v284_v30, %v283_v29  ;;  %v307_v34 = vmul.f32 %v284_v30, %v284_v30 }
  0x2f   : > { %475 = vst [vmem:[%s246_s7] sm:$0xff] %v474_v32   ;;  %v297_v35 = vrot.slane %v296_v33, 4  ;;  %v308_v36 = vadd.f32 %v307_v34, %v306_v31 }
  0x31   : > { %v298_v37 = vadd.f32 %v297_v35, %v296_v33  ;;  %v309_v38 = vrot.slane %v308_v36, 4 }
  0x33   : > { %v299_v39 = vrot.slane %v298_v37, 2  ;;  %v310_v40 = vadd.f32 %v309_v38, %v308_v36 }
  0x35   : > { %v300_v41 = vadd.f32 %v299_v39, %v298_v37  ;;  %v311_v42 = vrot.slane %v310_v40, 2 }
  0x37   : > { %v301_v43 = vrot.slane %v300_v41, 1  ;;  %v312_v44 = vadd.f32 %v311_v42, %v310_v40 }
  0x39   : > { %v302_v46 = vadd.f32 %v301_v43, %v300_v41  ;;  %v313_v47 = vrot.slane %v312_v44, 1 }
  0x3b   : > { %v303_v49 = vadd.f32 %v302_v46, %v295_v45  ;;  %v314_v50 = vadd.f32 %v313_v47, %v312_v44 }
  0x3d   : > { %304 = vst [vmem:[%s579_s21] sm:$0x1] %v303_v49  ;;  %v315_v51 = vadd.f32 %v314_v50, %v305_v48 }
  0x3f   : > { %316 = vst [vmem:[%s585_s24] sm:$0x1] %v315_v51 }
  0x40 PF: > { %s15_s17 = sadd.s32 1, %s527_s17   ;;  %s621_s15 = smov %s523_s16 }
  0x41   : > { %p12_p5 = scmp.ge.s32.totalorder %s15_s17, 4   ;;  %s622_s16 = smov %s624_s18 }
  0x43   :  { %14 = sbr.rel (!%p12_p5) target bundleno = 2 (0x2), region = 86 }

// kernel: _lambda_.11
= control target key start
LH: loop header
LB: loop body
LE: loop exit
PB: predicated region body
PF: predicated region fallthrough
CT: control target
= control target key end

     0   :  { %s731_s21 = smov 0   ;;  %s733_s22 = smov 0   ;;  %s794_s0 = inlined_call_operand.vmem [shape: bf16[2,16,128], index: 0, kind: input, shape index: {}]   ;;  %s795_s1 = inlined_call_operand.vmem [shape: f32[2,2,128], index: 1, kind: input, shape index: {}]   ;;  %s796_s2 = inlined_call_operand.vmem [shape: f32[4,128], index: 2, kind: input, shape index: {}]   ;;  %s797_s3 = inlined_call_operand.vmem [shape: bf16[2,16,128], index: 3, kind: input, shape index: {}]   ;;  %s798_s4 = inlined_call_operand.vmem [shape: bf16[2,16,128], index: 4, kind: output, shape index: {0}]   ;;  %s799_s5 = inlined_call_operand.vmem [shape: f32[2,1,128], index: 5, kind: output, shape index: {1}]   ;;  %s800_s6 = inlined_call_operand.vmem [shape: f32[2,1,128], index: 6, kind: output, shape index: {2}]  }
   0x1   :  { %s735_s23 = smov 0  }
   0x2 LB: > { %s29_s24 = sadd.s32 1, %s689_s22  ;;  %p616_p0 = scmp.ge.s32.totalorder %s693_s23, 1  ;;  %s693_s23 = sphi %s735_s23, %s17_s23   ;;  %s689_s22 = sphi %s733_s22, %s802_s22   ;;  %s685_s21 = sphi %s731_s21, %s801_s21  }
   0x3   : > { %p31_p1 = scmp.ge.s32.totalorder %s29_s24, 2  ;;  %p264_p2 = scmp.lt.s32.totalorder %s693_s23, 3 }
   0x5   : > { %s804_s24 = smov (%p31_p1, %s29_s24), 0  ;;  %p265_p3 = pnand %p616_p0, %p264_p2 }
   0x6   : > { %p322_p4 = scmp.lt.s32.totalorder (!%p265_p3), %s685_s21, 1 }
   0x7   : > { %268 = sbr.rel (%p265_p3) target bundleno = 73 (0x49), region = 36 }
   0xc   : > { %s806_s21 = smov (!%p322_p4, %s685_s21), 1  ;;  %v365_v0 = vld [vmem:[%s796_s2] sm:$0xf]  ;;  %v695_v1 = vmov 0.0  }
   0xd   : > { %s755_s29 = scalar_lea.vmem %s799_s5, %s806_s21  ;;  %s760_s8 = scalar_lea.vmem %s800_s6, %s806_s21  ;;  %v366_v2 = vperm.slane %v365_v0, 0  ;;  %v378_v28 = vperm.slane %v365_v0, 1  ;;  %v399_v34 = vperm.slane %v365_v0, 2  ;;  %v408_v36 = vperm.slane %v365_v0, 3 }
   0xe   : > { %421 = vst [vmem:[%s755_s29] sm:$0x1] %v695_v1  ;;  %s763_s9 = sshll.u32 %s806_s21, 3  ;;  %s619_s10 = sshll.u32 %s806_s21, 1 }
   0xf   : > { %422 = vst [vmem:[%s760_s8] sm:$0x1] %v695_v1  ;;  %s329_s13 = scalar_lea.vmem %s794_s0, %s763_s9  ;;  %s334_s16 = scalar_lea.vmem %s795_s1, %s619_s10 }
  0x10   : > { %v630_v3 = vld [vmem:[%s329_s13] sm:$0xff]   ;;  %s343_s19 = scalar_lea.vmem %s797_s3, %s763_s9  ;;  %s353_s25 = scalar_lea.vmem %s798_s4, %s763_s9 }
  0x11   : > { %v369_v4 = vld [vmem:[%s334_s16] sm:$0x3]  ;;  %v631_v5 = vunpack.c.l.bf16 %v630_v3  ;;  %v632_v6 = vunpack.c.h.bf16 %v630_v3 }
  0x12   : > { %v370_v7 = vperm.slane %v369_v4, 0  ;;  %v375_v8 = vperm.slane %v369_v4, 1  ;;  %v634_v27 = vld [vmem:[%s343_s19] sm:$0xff]  }
  0x13   : > { %v367_v9 = vmul.f32 %v631_v5, %v366_v2  ;;  %v368_v10 = vmul.f32 %v632_v6, %v366_v2  ;;  %v635_v35 = vunpack.c.l.bf16 %v634_v27  ;;  %v636_v38 = vunpack.c.h.bf16 %v634_v27 }
  0x14   : > { %v371_v11 = vmul.f32 %v631_v5, %v370_v7  ;;  %v372_v12 = vmul.f32 %v632_v6, %v370_v7 }
  0x15   : > { %v409_v44 = vmul.f32 %v635_v35, %v408_v36  ;;  %v410_v46 = vmul.f32 %v636_v38, %v408_v36  ;;  %v423_v1 = vld [vmem:[%s755_s29] sm:$0x1] }
  0x16   : > { %v373_v13 = vadd.f32 %v371_v11, %v367_v9  ;;  %v374_v14 = vadd.f32 %v372_v12, %v368_v10  ;;  %v433_v4 = vld [vmem:[%s760_s8] sm:$0x1] }
  0x18   : > { %v376_v15 = vadd.f32 %v375_v8, %v373_v13  ;;  %v377_v16 = vadd.f32 %v375_v8, %v374_v14 }
  0x1a   : > { %v383_v17 = vmul.f32 0.044715, %v376_v15  ;;  %v384_v18 = vmul.f32 0.044715, %v377_v16  ;;  %v381_v29 = vmul.f32 0.5, %v376_v15  ;;  %v382_v31 = vmul.f32 0.5, %v377_v16 }
  0x1b   : > { %v379_v39 = vmul.f32 %v378_v28, %v376_v15  ;;  %v380_v41 = vmul.f32 %v378_v28, %v377_v16 }
  0x1c   : > { %v385_v19 = vmul.f32 %v383_v17, %v376_v15  ;;  %v386_v20 = vmul.f32 %v384_v18, %v377_v16 }
  0x1e   : > { %v387_v21 = vmul.f32 %v385_v19, %v376_v15  ;;  %v388_v22 = vmul.f32 %v386_v20, %v377_v16 }
  0x20   : > { %v389_v23 = vadd.f32 %v387_v21, %v376_v15  ;;  %v390_v24 = vadd.f32 %v388_v22, %v377_v16 }
  0x22   : > { %v391_v25 = vmul.f32 0.7978846, %v389_v23  ;;  %v392_v26 = vmul.f32 0.7978846, %v390_v24 }
  0x24   : > { %667 = vtanh.f32 %v391_v25 }
  0x25   : > { %669 = vtanh.f32 %v392_v26 }
  0x2a   : > { %v668_v30 = vpop.eup %667 }
  0x2b   : > { %v670_v32 = vpop.eup %669  ;;  %v395_v33 = vadd.f32 1.0, %v668_v30 }
  0x2c   : > { %v396_v37 = vadd.f32 1.0, %v670_v32 }
  0x2d   : > { %v397_v40 = vmul.f32 %v395_v33, %v381_v29 }
  0x2e   : > { %v398_v42 = vmul.f32 %v396_v37, %v382_v31 }
  0x2f   : > { %v400_v43 = vmul.f32 %v399_v34, %v397_v40 }
  0x30   : > { %v401_v45 = vmul.f32 %v399_v34, %v398_v42 }
  0x31   : > { %v402_v47 = vadd.f32 %v400_v43, %v379_v39 }
  0x32   : > { %v403_v48 = vadd.f32 %v401_v45, %v380_v41 }
  0x33   : > { %v411_v49 = vadd.f32 %v409_v44, %v402_v47 }
  0x34   : > { %v412_v50 = vadd.f32 %v410_v46, %v403_v48 }
  0x35   : > { %v434_v51 = vmul.f32 %v411_v49, %v411_v49 }
  0x36   : > { %v640_v52 = vpack.c.bf16 %v412_v50, %v411_v49  ;;  %v424_v53 = vadd.f32 %v412_v50, %v411_v49  ;;  %v435_v54 = vmul.f32 %v412_v50, %v412_v50 }
  0x38   : > { %641 = vst [vmem:[%s353_s25] sm:$0xff] %v640_v52   ;;  %v425_v55 = vrot.slane %v424_v53, 4  ;;  %v436_v56 = vadd.f32 %v435_v54, %v434_v51 }
  0x3a   : > { %v426_v57 = vadd.f32 %v425_v55, %v424_v53  ;;  %v437_v58 = vrot.slane %v436_v56, 4 }
  0x3c   : > { %v427_v59 = vrot.slane %v426_v57, 2  ;;  %v438_v60 = vadd.f32 %v437_v58, %v436_v56 }
  0x3e   : > { %v428_v61 = vadd.f32 %v427_v59, %v426_v57  ;;  %v439_v62 = vrot.slane %v438_v60, 2 }
  0x40   : > { %v429_v63 = vrot.slane %v428_v61, 1  ;;  %v440_v0 = vadd.f32 %v439_v62, %v438_v60 }
  0x42   : > { %v430_v2 = vadd.f32 %v429_v63, %v428_v61  ;;  %v441_v3 = vrot.slane %v440_v0, 1 }
  0x44   : > { %v431_v5 = vadd.f32 %v430_v2, %v423_v1  ;;  %v442_v6 = vadd.f32 %v441_v3, %v440_v0 }
  0x46   : > { %432 = vst [vmem:[%s755_s29] sm:$0x1] %v431_v5  ;;  %v443_v7 = vadd.f32 %v442_v6, %v433_v4 }
  0x48   : > { %444 = vst [vmem:[%s760_s8] sm:$0x1] %v443_v7 }
  0x49 PF: > { %s17_s23 = sadd.s32 1, %s693_s23   ;;  %s801_s21 = smov %s689_s22 }
  0x4a   : > { %p14_p5 = scmp.ge.s32.totalorder %s17_s23, 4   ;;  %s802_s22 = smov %s804_s24 }
  0x4c   :  { %16 = sbr.rel (!%p14_p5) target bundleno = 2 (0x2), region = 100 }

// kernel: _lambda_.13
= control target key start
LH: loop header
LB: loop body
LE: loop exit
PB: predicated region body
PF: predicated region fallthrough
CT: control target
= control target key end

     0   :  { %s597_s15 = smov 0   ;;  %s599_s16 = smov 0   ;;  %s668_s0 = inlined_call_operand.vmem [shape: bf16[2,16,128], index: 0, kind: input, shape index: {}]   ;;  %s669_s1 = inlined_call_operand.vmem [shape: f32[2,2,128], index: 1, kind: input, shape index: {}]   ;;  %s670_s2 = inlined_call_operand.vmem [shape: f32[3,128], index: 2, kind: input, shape index: {}]   ;;  %s671_s3 = inlined_call_operand.vmem [shape: bf16[128,128], index: 3, kind: input, shape index: {}]   ;;  %s672_s4 = inlined_call_operand.vmem [shape: bf16[2,16,128], index: 4, kind: output, shape index: {}]  }
   0x1   :  { %s601_s17 = smov 0  }
   0x2 LB: > { %s26_s18 = sadd.s32 1, %s566_s16  ;;  %p465_p0 = scmp.ge.s32.totalorder %s570_s17, 1  ;;  %s570_s17 = sphi %s601_s17, %s14_s17   ;;  %s566_s16 = sphi %s599_s16, %s674_s16   ;;  %s562_s15 = sphi %s597_s15, %s673_s15  }
   0x3   : > { %p28_p1 = scmp.ge.s32.totalorder %s26_s18, 2  ;;  %p192_p2 = scmp.lt.s32.totalorder %s570_s17, 3 }
   0x5   : > { %s676_s18 = smov (%p28_p1, %s26_s18), 0  ;;  %p193_p3 = pnand %p465_p0, %p192_p2 }
   0x6   : > { %p231_p4 = scmp.lt.s32.totalorder (!%p193_p3), %s562_s15, 1 }
   0x7   : > { %196 = sbr.rel (%p193_p3) target bundleno = 185 (0xb9), region = 36 }
   0xc   : > { %v514_v0 = vld [vmem:[%s671_s3 + $0x38] sm:$0xff]  ;;  %v513_v1 = vld [vmem:[%s671_s3 + $0x30] sm:$0xff]  ;;  %s678_s15 = smov (!%p231_p4, %s562_s15), 1  ;;  %v512_v2 = vld [vmem:[%s671_s3 + $0x28] sm:$0xff] }
   0xd   : > { %339 = vmatpush.bf16.msra.mxu0 %v514_v0  ;;  %s505_s23 = sshll.u32 %s678_s15, 3  ;;  %s468_s24 = sshll.u32 %s678_s15, 1  ;;  %v511_v3 = vld [vmem:[%s671_s3 + $0x20] sm:$0xff]  ;;  %v510_v11 = vld [vmem:[%s671_s3 + $0x18] sm:$0xff]  ;;  %v509_v16 = vld [vmem:[%s671_s3 + $0x10] sm:$0xff] }
   0xe   : > { %s238_s29 = scalar_lea.vmem %s668_s0, %s505_s23  ;;  %s243_s6 = scalar_lea.vmem %s669_s1, %s468_s24  ;;  %v258_v5 = vld [vmem:[%s670_s2] sm:$0x7]  ;;  %v508_v20 = vld [vmem:[%s671_s3 + $0x8] sm:$0xff] }
   0xf   : > { %v516_v4 = vld [vmem:[%s238_s29] sm:$0xff]   ;;  %v259_v9 = vperm.slane %v258_v5, 0  ;;  %v271_v25 = vperm.slane %v258_v5, 1  ;;  %v355_v30 = vperm.slane %v258_v5, 2  ;;  %s252_s26 = scalar_lea.vmem %s672_s4, %s505_s23 }
  0x10   : > { %v262_v6 = vld [vmem:[%s243_s6] sm:$0x3]  ;;  %v517_v7 = vunpack.c.l.bf16 %v516_v4  ;;  %v518_v8 = vunpack.c.h.bf16 %v516_v4 }
  0x11   : > { %340 = vmatpush.bf16.msra.mxu0 %v513_v1  ;;  %v263_v10 = vperm.slane %v262_v6, 0  ;;  %v268_v19 = vperm.slane %v262_v6, 1  ;;  %v507_v23 = vld [vmem:[%s671_s3] sm:$0xff] }
  0x12   : > { %v260_v12 = vmul.f32 %v517_v7, %v259_v9  ;;  %v261_v13 = vmul.f32 %v518_v8, %v259_v9 }
  0x13   : > { %v264_v14 = vmul.f32 %v517_v7, %v263_v10  ;;  %v265_v15 = vmul.f32 %v518_v8, %v263_v10 }
  0x15   : > { %341 = vmatpush.bf16.msra.mxu0 %v512_v2  ;;  %v266_v17 = vadd.f32 %v264_v14, %v260_v12  ;;  %v267_v18 = vadd.f32 %v265_v15, %v261_v13 }
  0x17   : > { %v269_v21 = vadd.f32 %v268_v19, %v266_v17  ;;  %v270_v22 = vadd.f32 %v268_v19, %v267_v18 }
  0x19   : > { %342 = vmatpush.bf16.msra.mxu0 %v511_v3  ;;  %v274_v24 = vpack.c.bf16 %v270_v22, %v269_v21  ;;  %v272_v27 = vmul.f32 %v271_v25, %v269_v21  ;;  %v273_v28 = vmul.f32 %v271_v25, %v270_v22 }
  0x1d   : > { %343 = vmatpush.bf16.msra.mxu0 %v510_v11 }
  0x21   : > { %344 = vmatpush.bf16.msra.mxu0 %v509_v16 }
  0x25   : > { %345 = vmatpush.bf16.msra.mxu0 %v508_v20 }
  0x29   : > { %346 = vmatpush.bf16.msra.mxu0 %v507_v23 }
  0x2c   : > { %347 = vmatmul.bf16.vlgmr.msra.gmra.mxu0 %v274_v24 }
  0xa9   : > { %v348_v26 = vpop.f32.mrf.mxu0 }
  0xaa   : > { %v353_v29 = vadd.f32 %v348_v26, %v272_v27 }
  0xac   : > { %v356_v33 = vadd.f32 %v355_v30, %v353_v29 }
  0xb1   : > { %v350_v31 = vpop.f32.mrf.mxu0 }
  0xb2   : > { %v354_v32 = vadd.f32 %v350_v31, %v273_v28 }
  0xb4   : > { %v357_v34 = vadd.f32 %v355_v30, %v354_v32 }
  0xb6   : > { %v522_v35 = vpack.c.bf16 %v357_v34, %v356_v33 }
  0xb8   : > { %523 = vst [vmem:[%s252_s26] sm:$0xff] %v522_v35  }
  0xb9 PF: > { %s14_s17 = sadd.s32 1, %s570_s17   ;;  %s673_s15 = smov %s566_s16 }
  0xba   : > { %p11_p5 = scmp.ge.s32.totalorder %s14_s17, 4   ;;  %s674_s16 = smov %s676_s18 }
  0xbc   :  { %13 = sbr.rel (!%p11_p5) target bundleno = 2 (0x2), region = 69 }

// kernel: _lambda_.16
= control target key start
LH: loop header
LB: loop body
LE: loop exit
PB: predicated region body
PF: predicated region fallthrough
CT: control target
= control target key end

     0   :  { %s602_s18 = smov 0   ;;  %s604_s19 = smov 0   ;;  %s663_s0 = inlined_call_operand.vmem [shape: bf16[2,16,128], index: 0, kind: input, shape index: {}]   ;;  %s664_s1 = inlined_call_operand.vmem [shape: f32[2,2,128], index: 1, kind: input, shape index: {}]   ;;  %s665_s2 = inlined_call_operand.vmem [shape: f32[3,128], index: 2, kind: input, shape index: {}]   ;;  %s666_s3 = inlined_call_operand.vmem [shape: bf16[2,16,128], index: 3, kind: output, shape index: {0}]   ;;  %s667_s4 = inlined_call_operand.vmem [shape: f32[2,1,128], index: 4, kind: output, shape index: {1}]   ;;  %s668_s5 = inlined_call_operand.vmem [shape: f32[2,1,128], index: 5, kind: output, shape index: {2}]  }
   0x1   :  { %s606_s20 = smov 0  }
   0x2 LB: > { %s28_s21 = sadd.s32 1, %s565_s19  ;;  %p503_p0 = scmp.ge.s32.totalorder %s569_s20, 1  ;;  %s569_s20 = sphi %s606_s20, %s16_s20   ;;  %s565_s19 = sphi %s604_s19, %s670_s19   ;;  %s561_s18 = sphi %s602_s18, %s669_s18  }
   0x3   : > { %p30_p1 = scmp.ge.s32.totalorder %s28_s21, 2  ;;  %p222_p2 = scmp.lt.s32.totalorder %s569_s20, 3 }
   0x5   : > { %s672_s21 = smov (%p30_p1, %s28_s21), 0  ;;  %p223_p3 = pnand %p503_p0, %p222_p2 }
   0x6   : > { %p269_p4 = scmp.lt.s32.totalorder (!%p223_p3), %s561_s18, 1 }
   0x7   : > { %226 = sbr.rel (%p223_p3) target bundleno = 47 (0x2f), region = 32 }
   0xc   : > { %s674_s18 = smov (!%p269_p4, %s561_s18), 1  ;;  %v302_v0 = vld [vmem:[%s665_s2] sm:$0x7]  ;;  %v571_v1 = vmov 0.0  }
   0xd   : > { %s629_s26 = scalar_lea.vmem %s667_s4, %s674_s18  ;;  %s635_s29 = scalar_lea.vmem %s668_s5, %s674_s18  ;;  %v303_v2 = vperm.slane %v302_v0, 0  ;;  %v315_v15 = vperm.slane %v302_v0, 1 }
   0xe   : > { %326 = vst [vmem:[%s629_s26] sm:$0x1] %v571_v1  ;;  %s511_s30 = sshll.u32 %s674_s18, 3  ;;  %s506_s6 = sshll.u32 %s674_s18, 1 }
   0xf   : > { %327 = vst [vmem:[%s635_s29] sm:$0x1] %v571_v1  ;;  %s276_s9 = scalar_lea.vmem %s663_s0, %s511_s30  ;;  %s281_s12 = scalar_lea.vmem %s664_s1, %s506_s6 }
  0x10   : > { %v514_v3 = vld [vmem:[%s276_s9] sm:$0xff]   ;;  %s290_s15 = scalar_lea.vmem %s666_s3, %s511_s30 }
  0x11   : > { %v306_v4 = vld [vmem:[%s281_s12] sm:$0x3]  ;;  %v515_v5 = vunpack.c.l.bf16 %v514_v3  ;;  %v516_v6 = vunpack.c.h.bf16 %v514_v3 }
  0x12   : > { %v307_v7 = vperm.slane %v306_v4, 0  ;;  %v312_v8 = vperm.slane %v306_v4, 1 }
  0x13   : > { %v304_v9 = vmul.f32 %v515_v5, %v303_v2  ;;  %v305_v10 = vmul.f32 %v516_v6, %v303_v2 }
  0x14   : > { %v308_v11 = vmul.f32 %v515_v5, %v307_v7  ;;  %v309_v12 = vmul.f32 %v516_v6, %v307_v7 }
  0x15   : > { %v328_v34 = vld [vmem:[%s629_s26] sm:$0x1] }
  0x16   : > { %v310_v13 = vadd.f32 %v308_v11, %v304_v9  ;;  %v311_v14 = vadd.f32 %v309_v12, %v305_v10  ;;  %v338_v37 = vld [vmem:[%s635_s29] sm:$0x1] }
  0x18   : > { %v313_v16 = vadd.f32 %v312_v8, %v310_v13  ;;  %v314_v17 = vadd.f32 %v312_v8, %v311_v14 }
  0x1a   : > { %v316_v18 = vmul.f32 %v315_v15, %v313_v16  ;;  %v317_v19 = vmul.f32 %v315_v15, %v314_v17 }
  0x1c   : > { %v520_v20 = vpack.c.bf16 %v317_v19, %v316_v18  ;;  %v329_v21 = vadd.f32 %v317_v19, %v316_v18  ;;  %v339_v22 = vmul.f32 %v316_v18, %v316_v18  ;;  %v340_v23 = vmul.f32 %v317_v19, %v317_v19 }
  0x1e   : > { %521 = vst [vmem:[%s290_s15] sm:$0xff] %v520_v20   ;;  %v330_v24 = vrot.slane %v329_v21, 4  ;;  %v341_v25 = vadd.f32 %v340_v23, %v339_v22 }
  0x20   : > { %v331_v26 = vadd.f32 %v330_v24, %v329_v21  ;;  %v342_v27 = vrot.slane %v341_v25, 4 }
  0x22   : > { %v332_v28 = vrot.slane %v331_v26, 2  ;;  %v343_v29 = vadd.f32 %v342_v27, %v341_v25 }
  0x24   : > { %v333_v30 = vadd.f32 %v332_v28, %v331_v26  ;;  %v344_v31 = vrot.slane %v343_v29, 2 }
  0x26   : > { %v334_v32 = vrot.slane %v333_v30, 1  ;;  %v345_v33 = vadd.f32 %v344_v31, %v343_v29 }
  0x28   : > { %v335_v35 = vadd.f32 %v334_v32, %v333_v30  ;;  %v346_v36 = vrot.slane %v345_v33, 1 }
  0x2a   : > { %v336_v38 = vadd.f32 %v335_v35, %v328_v34  ;;  %v347_v39 = vadd.f32 %v346_v36, %v345_v33 }
  0x2c   : > { %337 = vst [vmem:[%s629_s26] sm:$0x1] %v336_v38  ;;  %v348_v40 = vadd.f32 %v347_v39, %v338_v37 }
  0x2e   : > { %349 = vst [vmem:[%s635_s29] sm:$0x1] %v348_v40 }
  0x2f PF: > { %s16_s20 = sadd.s32 1, %s569_s20   ;;  %s669_s18 = smov %s565_s19 }
  0x30   : > { %p13_p5 = scmp.ge.s32.totalorder %s16_s20, 4   ;;  %s670_s19 = smov %s672_s21 }
  0x32   :  { %15 = sbr.rel (!%p13_p5) target bundleno = 2 (0x2), region = 93 }

// kernel: _lambda_.12
= control target key start
LH: loop header
LB: loop body
LE: loop exit
PB: predicated region body
PF: predicated region fallthrough
CT: control target
= control target key end

     0   :  { %s771_s21 = smov 0   ;;  %s773_s22 = smov 0   ;;  %s860_s0 = inlined_call_operand.vmem [shape: bf16[2,16,128], index: 0, kind: input, shape index: {}]   ;;  %s861_s1 = inlined_call_operand.vmem [shape: f32[2,2,128], index: 1, kind: input, shape index: {}]   ;;  %s862_s2 = inlined_call_operand.vmem [shape: bf16[128,128], index: 2, kind: input, shape index: {}]   ;;  %s863_s3 = inlined_call_operand.vmem [shape: f32[3,128], index: 3, kind: input, shape index: {}]   ;;  %s864_s4 = inlined_call_operand.vmem [shape: bf16[2,16,128], index: 4, kind: output, shape index: {0}]   ;;  %s865_s5 = inlined_call_operand.vmem [shape: f32[2,1,128], index: 5, kind: output, shape index: {1}]   ;;  %s866_s6 = inlined_call_operand.vmem [shape: f32[2,1,128], index: 6, kind: output, shape index: {2}]  }
   0x1   :  { %s775_s23 = smov 0  }
   0x2 LB: > { %s29_s24 = sadd.s32 1, %s729_s22  ;;  %p623_p0 = scmp.ge.s32.totalorder %s733_s23, 1  ;;  %s733_s23 = sphi %s775_s23, %s17_s23   ;;  %s729_s22 = sphi %s773_s22, %s868_s22   ;;  %s725_s21 = sphi %s771_s21, %s867_s21  }
   0x3   : > { %p31_p1 = scmp.ge.s32.totalorder %s29_s24, 2  ;;  %p247_p2 = scmp.lt.s32.totalorder %s733_s23, 3 }
   0x5   : > { %s870_s24 = smov (%p31_p1, %s29_s24), 0  ;;  %p248_p3 = pnand %p623_p0, %p247_p2 }
   0x6   : > { %p296_p4 = scmp.lt.s32.totalorder (!%p248_p3), %s725_s21, 1 }
   0x7   : > { %251 = sbr.rel (%p248_p3) target bundleno = 222 (0xde), region = 36 }
   0xc   : > { %v672_v0 = vld [vmem:[%s862_s2 + $0x38] sm:$0xff]  ;;  %v671_v1 = vld [vmem:[%s862_s2 + $0x30] sm:$0xff]  ;;  %s872_s21 = smov (!%p296_p4, %s725_s21), 1  ;;  %v670_v2 = vld [vmem:[%s862_s2 + $0x28] sm:$0xff]  ;;  %v735_v3 = vmov 0.0  }
   0xd   : > { %403 = vmatpush.bf16.msra.mxu0 %v672_v0  ;;  %s804_s9 = scalar_lea.vmem %s865_s5, %s872_s21  ;;  %s810_s12 = scalar_lea.vmem %s866_s6, %s872_s21  ;;  %v669_v4 = vld [vmem:[%s862_s2 + $0x20] sm:$0xff]  ;;  %v668_v5 = vld [vmem:[%s862_s2 + $0x18] sm:$0xff]  ;;  %v667_v11 = vld [vmem:[%s862_s2 + $0x10] sm:$0xff] }
   0xe   : > { %446 = vst [vmem:[%s804_s9] sm:$0x1] %v735_v3  ;;  %s663_s13 = sshll.u32 %s872_s21, 3  ;;  %s626_s14 = sshll.u32 %s872_s21, 1  ;;  %v666_v15 = vld [vmem:[%s862_s2 + $0x8] sm:$0xff]  ;;  %v665_v18 = vld [vmem:[%s862_s2] sm:$0xff] }
   0xf   : > { %447 = vst [vmem:[%s810_s12] sm:$0x1] %v735_v3  ;;  %s303_s19 = scalar_lea.vmem %s860_s0, %s663_s13  ;;  %s308_s26 = scalar_lea.vmem %s861_s1, %s626_s14  ;;  %v336_v20 = vld [vmem:[%s863_s3] sm:$0x7] }
  0x10   : > { %v674_v6 = vld [vmem:[%s303_s19] sm:$0xff]   ;;  %v354_v21 = vperm.slane %v336_v20, 0  ;;  %v435_v40 = vperm.slane %v336_v20, 1  ;;  %s317_s18 = scalar_lea.vmem %s864_s4, %s663_s13 }
  0x11   : > { %404 = vmatpush.bf16.msra.mxu0 %v671_v1  ;;  %v329_v7 = vld [vmem:[%s308_s26] sm:$0x3]  ;;  %v675_v8 = vunpack.c.l.bf16 %v674_v6  ;;  %v676_v9 = vunpack.c.h.bf16 %v674_v6 }
  0x12   : > { %v330_v10 = vperm.slane %v329_v7, 0  ;;  %v333_v14 = vperm.slane %v329_v7, 1 }
  0x14   : > { %v331_v12 = vmul.f32 %v675_v8, %v330_v10  ;;  %v332_v13 = vmul.f32 %v676_v9, %v330_v10 }
  0x15   : > { %405 = vmatpush.bf16.msra.mxu0 %v670_v2  ;;  %v448_v61 = vld [vmem:[%s804_s9] sm:$0x1] }
  0x16   : > { %v334_v16 = vadd.f32 %v333_v14, %v331_v12  ;;  %v335_v17 = vadd.f32 %v333_v14, %v332_v13  ;;  %v458_v0 = vld [vmem:[%s810_s12] sm:$0x1] }
  0x18   : > { %v337_v19 = vpack.c.bf16 %v335_v17, %v334_v16 }
  0x19   : > { %406 = vmatpush.bf16.msra.mxu0 %v669_v4 }
  0x1d   : > { %407 = vmatpush.bf16.msra.mxu0 %v668_v5 }
  0x21   : > { %408 = vmatpush.bf16.msra.mxu0 %v667_v11 }
  0x25   : > { %409 = vmatpush.bf16.msra.mxu0 %v666_v15 }
  0x29   : > { %410 = vmatpush.bf16.msra.mxu0 %v665_v18 }
  0x2c   : > { %411 = vmatmul.bf16.vlgmr.msra.gmra.mxu0 %v337_v19 }
  0xa9   : > { %v412_v22 = vpop.f32.mrf.mxu0 }
  0xaa   : > { %v413_v23 = vadd.f32 %v412_v22, %v354_v21 }
  0xac   : > { %v419_v24 = vmul.f32 0.044715, %v413_v23  ;;  %v417_v38 = vmul.f32 0.5, %v413_v23 }
  0xae   : > { %v421_v25 = vmul.f32 %v419_v24, %v413_v23 }
  0xb0   : > { %v423_v26 = vmul.f32 %v421_v25, %v413_v23 }
  0xb1   : > { %v414_v27 = vpop.f32.mrf.mxu0 }
  0xb2   : > { %v425_v28 = vadd.f32 %v423_v26, %v413_v23  ;;  %v415_v29 = vadd.f32 %v414_v27, %v354_v21 }
  0xb4   : > { %v427_v30 = vmul.f32 0.7978846, %v425_v28  ;;  %v420_v31 = vmul.f32 0.044715, %v415_v29  ;;  %v418_v42 = vmul.f32 0.5, %v415_v29 }
  0xb6   : > { %707 = vtanh.f32 %v427_v30  ;;  %v422_v32 = vmul.f32 %v420_v31, %v415_v29 }
  0xb8   : > { %v424_v33 = vmul.f32 %v422_v32, %v415_v29 }
  0xba   : > { %v426_v34 = vadd.f32 %v424_v33, %v415_v29 }
  0xbc   : > { %v708_v35 = vpop.eup %707  ;;  %v428_v36 = vmul.f32 0.7978846, %v426_v34 }
  0xbd   : > { %v431_v37 = vadd.f32 1.0, %v708_v35 }
  0xbe   : > { %709 = vtanh.f32 %v428_v36 }
  0xbf   : > { %v433_v39 = vmul.f32 %v431_v37, %v417_v38 }
  0xc1   : > { %v436_v44 = vmul.f32 %v435_v40, %v433_v39 }
  0xc3   : > { %v459_v47 = vmul.f32 %v436_v44, %v436_v44 }
  0xc4   : > { %v710_v41 = vpop.eup %709 }
  0xc5   : > { %v432_v43 = vadd.f32 1.0, %v710_v41 }
  0xc7   : > { %v434_v45 = vmul.f32 %v432_v43, %v418_v42 }
  0xc9   : > { %v437_v46 = vmul.f32 %v435_v40, %v434_v45 }
  0xcb   : > { %v680_v48 = vpack.c.bf16 %v437_v46, %v436_v44  ;;  %v449_v49 = vadd.f32 %v437_v46, %v436_v44  ;;  %v460_v50 = vmul.f32 %v437_v46, %v437_v46 }
  0xcd   : > { %681 = vst [vmem:[%s317_s18] sm:$0xff] %v680_v48   ;;  %v450_v51 = vrot.slane %v449_v49, 4  ;;  %v461_v52 = vadd.f32 %v460_v50, %v459_v47 }
  0xcf   : > { %v451_v53 = vadd.f32 %v450_v51, %v449_v49  ;;  %v462_v54 = vrot.slane %v461_v52, 4 }
  0xd1   : > { %v452_v55 = vrot.slane %v451_v53, 2  ;;  %v463_v56 = vadd.f32 %v462_v54, %v461_v52 }
  0xd3   : > { %v453_v57 = vadd.f32 %v452_v55, %v451_v53  ;;  %v464_v58 = vrot.slane %v463_v56, 2 }
  0xd5   : > { %v454_v59 = vrot.slane %v453_v57, 1  ;;  %v465_v60 = vadd.f32 %v464_v58, %v463_v56 }
  0xd7   : > { %v455_v62 = vadd.f32 %v454_v59, %v453_v57  ;;  %v466_v63 = vrot.slane %v465_v60, 1 }
  0xd9   : > { %v456_v1 = vadd.f32 %v455_v62, %v448_v61  ;;  %v467_v2 = vadd.f32 %v466_v63, %v465_v60 }
  0xdb   : > { %457 = vst [vmem:[%s804_s9] sm:$0x1] %v456_v1  ;;  %v468_v3 = vadd.f32 %v467_v2, %v458_v0 }
  0xdd   : > { %469 = vst [vmem:[%s810_s12] sm:$0x1] %v468_v3 }
  0xde PF: > { %s17_s23 = sadd.s32 1, %s733_s23   ;;  %s867_s21 = smov %s729_s22 }
  0xdf   : > { %p14_p5 = scmp.ge.s32.totalorder %s17_s23, 4   ;;  %s868_s22 = smov %s870_s24 }
  0xe1   :  { %16 = sbr.rel (!%p14_p5) target bundleno = 2 (0x2), region = 97 }

// kernel: _lambda_.14
= control target key start
LH: loop header
LB: loop body
LE: loop exit
PB: predicated region body
PF: predicated region fallthrough
CT: control target
= control target key end

     0   :  { %s786_s21 = smov 0   ;;  %s788_s22 = smov 0   ;;  %s861_s0 = inlined_call_operand.vmem [shape: bf16[2,16,128], index: 0, kind: input, shape index: {}]   ;;  %s862_s1 = inlined_call_operand.vmem [shape: f32[3,128], index: 1, kind: input, shape index: {}]   ;;  %s863_s2 = inlined_call_operand.vmem [shape: bf16[128,128], index: 2, kind: input, shape index: {}]   ;;  %s864_s3 = inlined_call_operand.vmem [shape: f32[3,128], index: 3, kind: input, shape index: {}]   ;;  %s865_s4 = inlined_call_operand.vmem [shape: bf16[2,16,128], index: 4, kind: input, shape index: {}]   ;;  %s866_s5 = inlined_call_operand.vmem [shape: bf16[2,16,128], index: 5, kind: input, shape index: {}]   ;;  %s867_s6 = inlined_call_operand.vmem [shape: bf16[2,16,128], index: 6, kind: output, shape index: {}]  }
   0x1   :  { %s790_s23 = smov 0  }
   0x2 LB: > { %s28_s24 = sadd.s32 1, %s745_s22  ;;  %p627_p0 = scmp.ge.s32.totalorder %s749_s23, 1  ;;  %s749_s23 = sphi %s790_s23, %s16_s23   ;;  %s745_s22 = sphi %s788_s22, %s869_s22   ;;  %s741_s21 = sphi %s786_s21, %s868_s21  }
   0x3   : > { %p30_p1 = scmp.ge.s32.totalorder %s28_s24, 2  ;;  %p267_p2 = scmp.lt.s32.totalorder %s749_s23, 3 }
   0x5   : > { %s871_s24 = smov (%p30_p1, %s28_s24), 0  ;;  %p268_p3 = pnand %p627_p0, %p267_p2 }
   0x6   : > { %p324_p4 = scmp.lt.s32.totalorder (!%p268_p3), %s741_s21, 1 }
   0x7   : > { %271 = sbr.rel (%p268_p3) target bundleno = 191 (0xbf), region = 44 }
   0xc   : > { %v681_v0 = vld [vmem:[%s863_s2 + $0x38] sm:$0xff]  ;;  %v680_v1 = vld [vmem:[%s863_s2 + $0x30] sm:$0xff]  ;;  %s873_s21 = smov (!%p324_p4, %s741_s21), 1  ;;  %v367_v2 = vld [vmem:[%s862_s1] sm:$0x7] }
   0xd   : > { %464 = vmatpush.bf16.msra.mxu0 %v681_v0  ;;  %s813_s7 = sshll.u32 %s873_s21, 3  ;;  %v368_v3 = vperm.slane %v367_v2, 0  ;;  %v679_v4 = vld [vmem:[%s863_s2 + $0x28] sm:$0xff]  ;;  %v678_v10 = vld [vmem:[%s863_s2 + $0x20] sm:$0xff]  ;;  %v677_v13 = vld [vmem:[%s863_s2 + $0x18] sm:$0xff]  ;;  %v371_v25 = vperm.slane %v367_v2, 1 }
   0xe   : > { %s331_s10 = scalar_lea.vmem %s861_s0, %s813_s7  ;;  %v676_v18 = vld [vmem:[%s863_s2 + $0x10] sm:$0xff]  ;;  %v675_v23 = vld [vmem:[%s863_s2 + $0x8] sm:$0xff]  ;;  %v674_v24 = vld [vmem:[%s863_s2] sm:$0xff]  ;;  %v392_v31 = vperm.slane %v367_v2, 2  ;;  %s341_s28 = scalar_lea.vmem %s865_s4, %s813_s7 }
   0xf   : > { %v683_v5 = vld [vmem:[%s331_s10] sm:$0xff]   ;;  %s351_s10 = scalar_lea.vmem %s866_s5, %s813_s7  ;;  %s361_s13 = scalar_lea.vmem %s867_s6, %s813_s7 }
  0x10   : > { %v684_v6 = vunpack.c.l.bf16 %v683_v5  ;;  %v685_v7 = vunpack.c.h.bf16 %v683_v5  ;;  %v397_v42 = vld [vmem:[%s864_s3] sm:$0x7] }
  0x11   : > { %465 = vmatpush.bf16.msra.mxu0 %v680_v1  ;;  %v687_v43 = vld [vmem:[%s341_s28] sm:$0xff]   ;;  %v482_v46 = vperm.slane %v397_v42, 1  ;;  %v415_v47 = vperm.slane %v397_v42, 0  ;;  %v491_v53 = vperm.slane %v397_v42, 2 }
  0x12   : > { %v369_v8 = vmul.f32 %v684_v6, %v368_v3  ;;  %v370_v9 = vmul.f32 %v685_v7, %v368_v3  ;;  %v688_v45 = vunpack.c.l.bf16 %v687_v43  ;;  %v691_v48 = vld [vmem:[%s351_s10] sm:$0xff]   ;;  %v689_v49 = vunpack.c.h.bf16 %v687_v43 }
  0x13   : > { %v692_v52 = vunpack.c.l.bf16 %v691_v48  ;;  %v693_v54 = vunpack.c.h.bf16 %v691_v48 }
  0x14   : > { %v376_v11 = vmul.f32 0.044715, %v369_v8  ;;  %v377_v12 = vmul.f32 0.044715, %v370_v9  ;;  %v374_v26 = vmul.f32 0.5, %v369_v8  ;;  %v375_v28 = vmul.f32 0.5, %v370_v9 }
  0x15   : > { %466 = vmatpush.bf16.msra.mxu0 %v679_v4  ;;  %v372_v33 = vmul.f32 %v371_v25, %v369_v8  ;;  %v373_v35 = vmul.f32 %v371_v25, %v370_v9  ;;  %v483_v50 = vmul.f32 %v688_v45, %v482_v46  ;;  %v484_v55 = vmul.f32 %v689_v49, %v482_v46 }
  0x16   : > { %v378_v14 = vmul.f32 %v376_v11, %v369_v8  ;;  %v379_v15 = vmul.f32 %v377_v12, %v370_v9  ;;  %v492_v58 = vmul.f32 %v692_v52, %v491_v53  ;;  %v493_v60 = vmul.f32 %v693_v54, %v491_v53 }
  0x18   : > { %v380_v16 = vmul.f32 %v378_v14, %v369_v8  ;;  %v381_v17 = vmul.f32 %v379_v15, %v370_v9 }
  0x19   : > { %467 = vmatpush.bf16.msra.mxu0 %v678_v10 }
  0x1a   : > { %v382_v19 = vadd.f32 %v380_v16, %v369_v8  ;;  %v383_v20 = vadd.f32 %v381_v17, %v370_v9 }
  0x1c   : > { %v384_v21 = vmul.f32 0.7978846, %v382_v19  ;;  %v385_v22 = vmul.f32 0.7978846, %v383_v20 }
  0x1d   : > { %468 = vmatpush.bf16.msra.mxu0 %v677_v13 }
  0x1e   : > { %723 = vtanh.f32 %v384_v21 }
  0x1f   : > { %725 = vtanh.f32 %v385_v22 }
  0x21   : > { %469 = vmatpush.bf16.msra.mxu0 %v676_v18 }
  0x24   : > { %v724_v27 = vpop.eup %723 }
  0x25   : > { %470 = vmatpush.bf16.msra.mxu0 %v675_v23  ;;  %v726_v29 = vpop.eup %725  ;;  %v388_v30 = vadd.f32 1.0, %v724_v27 }
  0x26   : > { %v389_v32 = vadd.f32 1.0, %v726_v29 }
  0x27   : > { %v390_v34 = vmul.f32 %v388_v30, %v374_v26 }
  0x28   : > { %v391_v36 = vmul.f32 %v389_v32, %v375_v28 }
  0x29   : > { %471 = vmatpush.bf16.msra.mxu0 %v674_v24  ;;  %v393_v37 = vmul.f32 %v392_v31, %v390_v34 }
  0x2a   : > { %v394_v38 = vmul.f32 %v392_v31, %v391_v36 }
  0x2b   : > { %v395_v39 = vadd.f32 %v393_v37, %v372_v33 }
  0x2c   : > { %v396_v40 = vadd.f32 %v394_v38, %v373_v35 }
  0x2e   : > { %v398_v41 = vpack.c.bf16 %v396_v40, %v395_v39 }
  0x30   : > { %472 = vmatmul.bf16.vlgmr.msra.gmra.mxu0 %v398_v41 }
  0xad   : > { %v473_v44 = vpop.f32.mrf.mxu0 }
  0xae   : > { %v474_v51 = vadd.f32 %v473_v44, %v415_v47 }
  0xb0   : > { %v485_v57 = vadd.f32 %v483_v50, %v474_v51 }
  0xb2   : > { %v494_v62 = vadd.f32 %v492_v58, %v485_v57 }
  0xb5   : > { %v475_v56 = vpop.f32.mrf.mxu0 }
  0xb6   : > { %v476_v59 = vadd.f32 %v475_v56, %v415_v47 }
  0xb8   : > { %v486_v61 = vadd.f32 %v484_v55, %v476_v59 }
  0xba   : > { %v495_v63 = vadd.f32 %v493_v60, %v486_v61 }
  0xbc   : > { %v697_v0 = vpack.c.bf16 %v495_v63, %v494_v62 }
  0xbe   : > { %698 = vst [vmem:[%s361_s13] sm:$0xff] %v697_v0  }
  0xbf PF: > { %s16_s23 = sadd.s32 1, %s749_s23   ;;  %s868_s21 = smov %s745_s22 }
  0xc0   : > { %p13_p5 = scmp.ge.s32.totalorder %s16_s23, 4   ;;  %s869_s22 = smov %s871_s24 }
  0xc2   :  { %15 = sbr.rel (!%p13_p5) target bundleno = 2 (0x2), region = 80 }

// kernel: _lambda_.17
= control target key start
LH: loop header
LB: loop body
LE: loop exit
PB: predicated region body
PF: predicated region fallthrough
CT: control target
= control target key end

     0   :  { %s774_s21 = smov 0   ;;  %s776_s22 = smov 0   ;;  %s837_s0 = inlined_call_operand.vmem [shape: bf16[2,16,128], index: 0, kind: input, shape index: {}]   ;;  %s838_s1 = inlined_call_operand.vmem [shape: f32[2,2,128], index: 1, kind: input, shape index: {}]   ;;  %s839_s2 = inlined_call_operand.vmem [shape: f32[6,128], index: 2, kind: input, shape index: {}]   ;;  %s840_s3 = inlined_call_operand.vmem [shape: bf16[2,16,128], index: 3, kind: input, shape index: {}]   ;;  %s841_s4 = inlined_call_operand.vmem [shape: bf16[2,16,128], index: 4, kind: input, shape index: {}]   ;;  %s842_s5 = inlined_call_operand.vmem [shape: bf16[2,16,128], index: 5, kind: input, shape index: {}]   ;;  %s843_s6 = inlined_call_operand.vmem [shape: bf16[2,16,128], index: 6, kind: output, shape index: {}]  }
   0x1   :  { %s778_s23 = smov 0  }
   0x2 LB: > { %s28_s24 = sadd.s32 1, %s733_s22  ;;  %p647_p0 = scmp.ge.s32.totalorder %s737_s23, 1  ;;  %s737_s23 = sphi %s778_s23, %s16_s23   ;;  %s733_s22 = sphi %s776_s22, %s845_s22   ;;  %s729_s21 = sphi %s774_s21, %s844_s21  }
   0x3   : > { %p30_p1 = scmp.ge.s32.totalorder %s28_s24, 2  ;;  %p293_p2 = scmp.lt.s32.totalorder %s737_s23, 3 }
   0x5   : > { %s847_s24 = smov (%p30_p1, %s28_s24), 0  ;;  %p294_p3 = pnand %p647_p0, %p293_p2 }
   0x6   : > { %p363_p4 = scmp.lt.s32.totalorder (!%p294_p3), %s729_s21, 1 }
   0x7   : > { %297 = sbr.rel (%p294_p3) target bundleno = 60 (0x3c), region = 44 }
   0xc   : > { %s849_s21 = smov (!%p363_p4, %s729_s21), 1  ;;  %v795_v0 = vld [vmem:[%s839_s2] sm:$0x3f] }
   0xd   : > { %s797_s27 = sshll.u32 %s849_s21, 3  ;;  %s650_s28 = sshll.u32 %s849_s21, 1  ;;  %v421_v1 = vperm.slane %v795_v0, 0  ;;  %v433_v27 = vperm.slane %v795_v0, 1  ;;  %v454_v34 = vperm.slane %v795_v0, 2  ;;  %v463_v36 = vperm.slane %v795_v0, 3 }
   0xe   : > { %s370_s7 = scalar_lea.vmem %s837_s0, %s797_s27  ;;  %s375_s10 = scalar_lea.vmem %s838_s1, %s650_s28  ;;  %v472_v43 = vperm.slane %v795_v0, 4  ;;  %v481_v50 = vperm.slane %v795_v0, 5 }
   0xf   : > { %v667_v2 = vld [vmem:[%s370_s7] sm:$0xff]   ;;  %s384_s13 = scalar_lea.vmem %s840_s3, %s797_s27  ;;  %s394_s16 = scalar_lea.vmem %s841_s4, %s797_s27 }
  0x10   : > { %v424_v3 = vld [vmem:[%s375_s10] sm:$0x3]  ;;  %v668_v4 = vunpack.c.l.bf16 %v667_v2  ;;  %v669_v5 = vunpack.c.h.bf16 %v667_v2  ;;  %s404_s19 = scalar_lea.vmem %s842_s5, %s797_s27  ;;  %s414_s25 = scalar_lea.vmem %s843_s6, %s797_s27 }
  0x11   : > { %v425_v6 = vperm.slane %v424_v3, 0  ;;  %v430_v7 = vperm.slane %v424_v3, 1  ;;  %v671_v26 = vld [vmem:[%s384_s13] sm:$0xff]  }
  0x12   : > { %v422_v8 = vmul.f32 %v668_v4, %v421_v1  ;;  %v423_v9 = vmul.f32 %v669_v5, %v421_v1  ;;  %v675_v31 = vld [vmem:[%s394_s16] sm:$0xff]   ;;  %v672_v35 = vunpack.c.l.bf16 %v671_v26  ;;  %v673_v38 = vunpack.c.h.bf16 %v671_v26 }
  0x13   : > { %v426_v10 = vmul.f32 %v668_v4, %v425_v6  ;;  %v427_v11 = vmul.f32 %v669_v5, %v425_v6  ;;  %v679_v39 = vld [vmem:[%s404_s19] sm:$0xff]   ;;  %v676_v42 = vunpack.c.l.bf16 %v675_v31  ;;  %v677_v46 = vunpack.c.h.bf16 %v675_v31 }
  0x14   : > { %v464_v48 = vmul.f32 %v672_v35, %v463_v36  ;;  %v680_v49 = vunpack.c.l.bf16 %v679_v39  ;;  %v465_v52 = vmul.f32 %v673_v38, %v463_v36  ;;  %v681_v53 = vunpack.c.h.bf16 %v679_v39 }
  0x15   : > { %v428_v12 = vadd.f32 %v426_v10, %v422_v8  ;;  %v429_v13 = vadd.f32 %v427_v11, %v423_v9  ;;  %v473_v55 = vmul.f32 %v676_v42, %v472_v43  ;;  %v474_v57 = vmul.f32 %v677_v46, %v472_v43 }
  0x16   : > { %v482_v59 = vmul.f32 %v680_v49, %v481_v50  ;;  %v483_v61 = vmul.f32 %v681_v53, %v481_v50 }
  0x17   : > { %v431_v14 = vadd.f32 %v430_v7, %v428_v12  ;;  %v432_v15 = vadd.f32 %v430_v7, %v429_v13 }
  0x19   : > { %v438_v16 = vmul.f32 0.044715, %v431_v14  ;;  %v439_v17 = vmul.f32 0.044715, %v432_v15  ;;  %v436_v28 = vmul.f32 0.5, %v431_v14  ;;  %v437_v30 = vmul.f32 0.5, %v432_v15 }
  0x1a   : > { %v434_v40 = vmul.f32 %v433_v27, %v431_v14  ;;  %v435_v44 = vmul.f32 %v433_v27, %v432_v15 }
  0x1b   : > { %v440_v18 = vmul.f32 %v438_v16, %v431_v14  ;;  %v441_v19 = vmul.f32 %v439_v17, %v432_v15 }
  0x1d   : > { %v442_v20 = vmul.f32 %v440_v18, %v431_v14  ;;  %v443_v21 = vmul.f32 %v441_v19, %v432_v15 }
  0x1f   : > { %v444_v22 = vadd.f32 %v442_v20, %v431_v14  ;;  %v445_v23 = vadd.f32 %v443_v21, %v432_v15 }
  0x21   : > { %v446_v24 = vmul.f32 0.7978846, %v444_v22  ;;  %v447_v25 = vmul.f32 0.7978846, %v445_v23 }
  0x23   : > { %711 = vtanh.f32 %v446_v24 }
  0x24   : > { %713 = vtanh.f32 %v447_v25 }
  0x29   : > { %v712_v29 = vpop.eup %711 }
  0x2a   : > { %v714_v32 = vpop.eup %713  ;;  %v450_v33 = vadd.f32 1.0, %v712_v29 }
  0x2b   : > { %v451_v37 = vadd.f32 1.0, %v714_v32 }
  0x2c   : > { %v452_v41 = vmul.f32 %v450_v33, %v436_v28 }
  0x2d   : > { %v453_v45 = vmul.f32 %v451_v37, %v437_v30 }
  0x2e   : > { %v455_v47 = vmul.f32 %v454_v34, %v452_v41 }
  0x2f   : > { %v456_v51 = vmul.f32 %v454_v34, %v453_v45 }
  0x30   : > { %v457_v54 = vadd.f32 %v455_v47, %v434_v40 }
  0x31   : > { %v458_v56 = vadd.f32 %v456_v51, %v435_v44 }
  0x32   : > { %v466_v58 = vadd.f32 %v464_v48, %v457_v54 }
  0x33   : > { %v467_v60 = vadd.f32 %v465_v52, %v458_v56 }
  0x34   : > { %v475_v62 = vadd.f32 %v473_v55, %v466_v58 }
  0x35   : > { %v476_v63 = vadd.f32 %v474_v57, %v467_v60 }
  0x36   : > { %v484_v1 = vadd.f32 %v482_v59, %v475_v62 }
  0x37   : > { %v485_v2 = vadd.f32 %v483_v61, %v476_v63 }
  0x39   : > { %v685_v0 = vpack.c.bf16 %v485_v2, %v484_v1 }
  0x3b   : > { %686 = vst [vmem:[%s414_s25] sm:$0xff] %v685_v0  }
  0x3c PF: > { %s16_s23 = sadd.s32 1, %s737_s23   ;;  %s844_s21 = smov %s733_s22 }
  0x3d   : > { %p13_p5 = scmp.ge.s32.totalorder %s16_s23, 4   ;;  %s845_s22 = smov %s847_s24 }
  0x3f   :  { %15 = sbr.rel (!%p13_p5) target bundleno = 2 (0x2), region = 86 }

</bundles_post_ra>
